<compile_context>
chip_gen: v5e
topology: v5e:2x2
jax: 0.10.0
libtpu: 0.0.40
codegen_flags: <defaults>
</compile_context>

<pallas_src>
import jax
import jax.numpy as jnp
from jax import lax
from jax.experimental import pallas as pl
from jax.experimental.pallas import tpu as pltpu

LANE = 128


def _round_up(x, m):
    return (x + m - 1) // m * m


# --------------------------------------------------------------------------------------
# Kernels: one (tile_m, tile_n) output tile of relu(x_col @ w + b [+ alpha*y]).
# --------------------------------------------------------------------------------------
def _conv_gemm_kernel_residual(x_ref, w_ref, b_ref, y_ref, alpha_ref, o_ref, acc_ref):
    k = pl.program_id(2)

    @pl.when(k == 0)
    def _():
        acc_ref[...] = jnp.zeros_like(acc_ref)

    # Single large-K contraction per step: the KH*KW taps are already folded into K
    # (im2col), so the whole tap reduction happens inside the MXU accumulation.
    acc_ref[...] += jnp.dot(x_ref[...], w_ref[...],
                            preferred_element_type=jnp.float32)

    @pl.when(k == pl.num_programs(2) - 1)
    def _():
        acc = acc_ref[...] + b_ref[...]                                  # bias (f32)
        acc = acc + alpha_ref[0] * y_ref[...].astype(jnp.float32)       # alpha * residual
        o_ref[...] = jnp.maximum(acc, 0.0).astype(o_ref.dtype)          # ReLU epilogue


def _conv_gemm_kernel(x_ref, w_ref, b_ref, o_ref, acc_ref):
    k = pl.program_id(2)

    @pl.when(k == 0)
    def _():
        acc_ref[...] = jnp.zeros_like(acc_ref)

    acc_ref[...] += jnp.dot(x_ref[...], w_ref[...],
                            preferred_element_type=jnp.float32)

    @pl.when(k == pl.num_programs(2) - 1)
    def _():
        acc = acc_ref[...] + b_ref[...]
        o_ref[...] = jnp.maximum(acc, 0.0).astype(o_ref.dtype)


# --------------------------------------------------------------------------------------
# Wrapper
# --------------------------------------------------------------------------------------
def fused_conv_bias_add_relu(x_nchw, w_oihw, b, y_nchw=None, alpha=1.0, *,
                             tile_m=None, tile_n=None, tile_k=None,
                             compute_dtype=jnp.bfloat16):
    """out = relu(conv2d(x, W, b, stride=1, padding='same') + alpha * y), NCHW in/out."""
    N, Cin, H, W = x_nchw.shape
    Cout, Cin_w, KH, KW = w_oihw.shape
    assert Cin_w == Cin, "grouped convolutions are not supported"
    assert KH % 2 == 1 and KW % 2 == 1, "'same' padding assumes odd kernel sizes"
    ph, pw = KH // 2, KW // 2

    K_total = KH * KW * Cin              # im2col contraction length (taps folded into K)
    Kp = _round_up(K_total, LANE)
    Cout_p = _round_up(Cout, LANE)
    M_total = N * H * W

    # ---- Tile selection (review): bigger tiles amortize the per-grid-step overhead,
    #      N toward 256 and a large K feed the 256-wide MXU on v6e/v7x, and the f32
    #      accumulator / per-step blocks stay well within scoped VMEM.
    if tile_n is None:
        tile_n = 256 if Cout_p % 256 == 0 else LANE
    if tile_k is None:
        tile_k = Kp if Kp <= 2048 else 1024
        while Kp % tile_k:
            tile_k -= LANE
    assert tile_k % LANE == 0 and Kp % tile_k == 0
    if tile_m is None:
        tile_m = min(512, _round_up(M_total, 8))
    tile_m = _round_up(tile_m, 8)
    M_pad = _round_up(M_total, tile_m)
    nM, nN, nK = M_pad // tile_m, Cout_p // tile_n, Kp // tile_k

    # ---- Wrapper-side im2col (NHWC, bf16 operands for the MXU; f32 epilogue in-kernel).
    x = jnp.transpose(x_nchw, (0, 2, 3, 1)).astype(compute_dtype)
    x = jnp.pad(x, ((0, 0), (ph, ph), (pw, pw), (0, 0)))          # 'same' spatial halo only
    cols = [lax.slice(x, (0, kh, kw, 0), (N, kh + H, kw + W, Cin))
            for kh in range(KH) for kw in range(KW)]
    x_col = jnp.concatenate(cols, axis=-1).reshape(M_total, K_total)
    x_col = jnp.pad(x_col, ((0, M_pad - M_total), (0, Kp - K_total)))

    # Weights: OIHW -> (KH, KW, Cin, Cout) -> (K_total, Cout), matching the x_col tap order.
    w = jnp.transpose(w_oihw, (2, 3, 1, 0)).astype(compute_dtype).reshape(K_total, Cout)
    w = jnp.pad(w, ((0, Kp - K_total), (0, Cout_p - Cout)))

    b2 = jnp.pad(b.astype(jnp.float32), (0, Cout_p - Cout)).reshape(1, Cout_p)

    out_dtype = x_nchw.dtype
    have_res = y_nchw is not None
    if have_res:
        # Residual DMA'd in its native dtype (no wrapper-side f32 materialization);
        # upcast to f32 inside the kernel before the alpha-add.
        y_col = jnp.transpose(y_nchw, (0, 2, 3, 1)).reshape(M_total, Cout)
        y_col = jnp.pad(y_col, ((0, M_pad - M_total), (0, Cout_p - Cout)))
        alpha_arr = jnp.asarray([alpha], dtype=jnp.float32)

    # ---- Specs / compiler params.
    grid = (nM, nN, nK)
    x_spec = pl.BlockSpec((tile_m, tile_k), lambda i, j, k: (i, k))
    o_spec = pl.BlockSpec((tile_m, tile_n), lambda i, j, k: (i, j))   # lane-dense stores
    y_spec = pl.BlockSpec((tile_m, tile_n), lambda i, j, k: (i, j))
    a_spec = pl.BlockSpec(memory_space=pltpu.MemorySpace.SMEM)

    consts_are_grid_constant = (nN == 1 and nK == 1)

    def _weight_bias_specs(single_buffer):
        kwargs = {}
        if single_buffer and consts_are_grid_constant:
            # Weight / bias block index never changes across the grid -> single buffer.
            kwargs = dict(pipeline_mode=pl.Buffered(1))
        if consts_are_grid_constant:
            w_spec = pl.BlockSpec((tile_k, tile_n), lambda i, j, k: (0, 0), **kwargs)
            b_spec = pl.BlockSpec((1, tile_n), lambda i, j, k: (0, 0), **kwargs)
        else:
            w_spec = pl.BlockSpec((tile_k, tile_n), lambda i, j, k: (k, j))
            b_spec = pl.BlockSpec((1, tile_n), lambda i, j, k: (0, j))
        return w_spec, b_spec

    itm = jnp.dtype(compute_dtype).itemsize
    ito = jnp.dtype(out_dtype).itemsize
    ity = jnp.dtype(y_col.dtype).itemsize if have_res else 0
    step_bytes = (2 * tile_m * tile_k * itm            # x_col tiles (double-buffered)
                  + 2 * tile_k * tile_n * itm          # weights
                  + 2 * 8 * tile_n * 4                 # bias
                  + 2 * tile_m * tile_n * (ito + ity)  # output (+ residual) tiles
                  + tile_m * tile_n * 4)               # f32 accumulator scratch
    vmem_limit = int(min(max(2 * step_bytes, 16 * 1024 * 1024), 64 * 1024 * 1024))

    flops = 2 * M_total * K_total * Cout
    bytes_accessed = (M_pad * Kp * itm + Kp * Cout_p * itm + Cout_p * 4
                      + M_pad * Cout_p * (ito + ity))
    cost = pl.CostEstimate(flops=flops, transcendentals=0,
                           bytes_accessed=bytes_accessed)

    cparams = pltpu.CompilerParams(
        # M / Cout tiles are independent (megacore-shardable on v7x); K is the reduction.
        dimension_semantics=("parallel", "parallel", "arbitrary"),
        vmem_limit_bytes=vmem_limit)

    out_shape = jax.ShapeDtypeStruct((M_pad, Cout_p), out_dtype)
    scratch = [pltpu.VMEM((tile_m, tile_n), jnp.float32)]

    def _call(single_buffer_consts):
        w_spec, b_spec = _weight_bias_specs(single_buffer_consts)
        if have_res:
            return pl.pallas_call(
                _conv_gemm_kernel_residual,
                out_shape=out_shape, grid=grid,
                in_specs=[x_spec, w_spec, b_spec, y_spec, a_spec],
                out_specs=o_spec, scratch_shapes=scratch,
                compiler_params=cparams, cost_estimate=cost,
            )(x_col, w, b2, y_col, alpha_arr)
        return pl.pallas_call(
            _conv_gemm_kernel,
            out_shape=out_shape, grid=grid,
            in_specs=[x_spec, w_spec, b_spec],
            out_specs=o_spec, scratch_shapes=scratch,
            compiler_params=cparams, cost_estimate=cost,
        )(x_col, w, b2)

    if consts_are_grid_constant:
        try:
            out = _call(True)
        except Exception:
            # TODO(synk): pl.Buffered(1) unsupported on this JAX build; default buffering.
            out = _call(False)
    else:
        out = _call(False)

    out = out[:M_total, :Cout].reshape(N, H, W, Cout)
    return jnp.transpose(out, (0, 3, 1, 2))             # back to NCHW (PyTorch interface)


# --------------------------------------------------------------------------------------
# Reference & self-test
# --------------------------------------------------------------------------------------
def _reference(x_nchw, w_oihw, b, y_nchw, alpha, compute_dtype):
    # Same bf16 operand rounding as the kernel, f32 accumulation -> differences are only
    # summation order.
    out = lax.conv_general_dilated(
        x_nchw.astype(compute_dtype), w_oihw.astype(compute_dtype),
        window_strides=(1, 1), padding="SAME",
        dimension_numbers=("NCHW", "OIHW", "NCHW"),
        preferred_element_type=jnp.float32)
    out = out + b.reshape(1, -1, 1, 1).astype(jnp.float32)
    if y_nchw is not None:
        out = out + alpha * y_nchw.astype(jnp.float32)
    return jnp.maximum(out, 0.0).astype(x_nchw.dtype)


if __name__ == "__main__":
    key = jax.random.PRNGKey(0)
    kx, kwt, kb, ky = jax.random.split(key, 4)

    # Small shapes consistent with a Conv2d(4 -> 8, kernel 3, padding 1) fused module.
    N, Cin, Cout, H, W, K = 2, 4, 8, 16, 16, 3
    alpha = 0.5

    x = jax.random.normal(kx, (N, Cin, H, W), dtype=jnp.float32)
    w = jax.random.normal(kwt, (Cout, Cin, K, K), dtype=jnp.float32) * 0.1
    b = jax.random.normal(kb, (Cout,), dtype=jnp.float32) * 0.1
    y = jax.random.normal(ky, (N, Cout, H, W), dtype=jnp.float32)

    # Residual path.
    out = jax.block_until_ready(fused_conv_bias_add_relu(x, w, b, y, alpha))
    ref = _reference(x, w, b, y, alpha, jnp.bfloat16)
    assert out.shape == (N, Cout, H, W)
    assert jnp.allclose(out, ref, atol=2e-3, rtol=2e-3), (
        float(jnp.max(jnp.abs(out - ref))))

    # No-residual fast path (no zero residual materialized or DMA'd).
    out2 = jax.block_until_ready(fused_conv_bias_add_relu(x, w, b))
    ref2 = _reference(x, w, b, None, 1.0, jnp.bfloat16)
    assert jnp.allclose(out2, ref2, atol=2e-3, rtol=2e-3), (
        float(jnp.max(jnp.abs(out2 - ref2))))

    print("KERNEL_OK")
</pallas_src>

<mosaic_0001>
module attributes {stable_mosaic.version = 11 : i64} {
  func.func @_conv_gemm_kernel_residual(%arg0: i32, %arg1: i32, %arg2: i32, %arg3: memref<512x128xbf16, #tpu.memory_space<vmem>>, %arg4: memref<128x128xbf16, #tpu.memory_space<vmem>>, %arg5: memref<1x128xf32, #tpu.memory_space<vmem>>, %arg6: memref<512x128xf32, #tpu.memory_space<vmem>>, %arg7: memref<1xf32, #tpu.memory_space<smem>>, %arg8: memref<512x128xf32, #tpu.memory_space<vmem>>, %arg9: memref<512x128xf32, #tpu.memory_space<vmem>>) attributes {dimension_semantics = [#tpu.dimension_semantics<parallel>, #tpu.dimension_semantics<parallel>, #tpu.dimension_semantics<arbitrary>], iteration_bounds = array<i64: 1, 1, 1>, scalar_prefetch = 0 : i64, scratch_operands = 1 : i64, tpu.core_type = #tpu.core_type<tc>, window_params = [{transform_indices = @transform_0, window_bounds = array<i64: 512, 128>}, {pipeline_mode = #tpu.pipeline_mode<synchronous>, transform_indices = @transform_1, window_bounds = array<i64: 128, 128>}, {pipeline_mode = #tpu.pipeline_mode<synchronous>, transform_indices = @transform_2, window_bounds = array<i64: 1, 128>}, {transform_indices = @transform_3, window_bounds = array<i64: 512, 128>}, {transform_indices = @transform_4, window_bounds = array<i64: 1>}, {transform_indices = @transform_5, window_bounds = array<i64: 512, 128>}]} {
    %c0_i32 = arith.constant 0 : i32
    %0 = arith.cmpi eq, %arg2, %c0_i32 : i32
    %1 = arith.extui %0 : i1 to i32
    %c0_i32_0 = arith.constant 0 : i32
    %2 = arith.cmpi ne, %1, %c0_i32_0 : i32
    scf.if %2 {
      %cst_10 = arith.constant 0.000000e+00 : f32
      %12 = vector.broadcast %cst_10 : f32 to vector<512x128xf32>
      %c0_11 = arith.constant 0 : index
      %c0_12 = arith.constant 0 : index
      %13 = vector.load %arg9[%c0_11, %c0_12] : memref<512x128xf32, #tpu.memory_space<vmem>>, vector<512x128xf32>
      tpu.vector_store %arg9[%c0_11, %c0_12], %12 {strides = array<i32>} : memref<512x128xf32, #tpu.memory_space<vmem>>, vector<512x128xf32>,
    } else {
    }
    %c0 = arith.constant 0 : index
    %c0_1 = arith.constant 0 : index
    %3 = vector.load %arg9[%c0, %c0_1] : memref<512x128xf32, #tpu.memory_space<vmem>>, vector<512x128xf32>
    %c0_2 = arith.constant 0 : index
    %c0_3 = arith.constant 0 : index
    %4 = vector.load %arg3[%c0_2, %c0_3] : memref<512x128xbf16, #tpu.memory_space<vmem>>, vector<512x128xbf16>
    %c0_4 = arith.constant 0 : index
    %c0_5 = arith.constant 0 : index
    %5 = vector.load %arg4[%c0_4, %c0_5] : memref<128x128xbf16, #tpu.memory_space<vmem>>, vector<128x128xbf16>
    %cst = arith.constant dense<0.000000e+00> : vector<512x128xf32>
    %6 = tpu.matmul %4, %5, %cst {dimension_numbers = #tpu.dot_dimension_numbers<[1], [0], [0], [1], [0, 0, 1, 1], [], []>} : vector<512x128xbf16>, vector<128x128xbf16>, vector<512x128xf32> -> vector<512x128xf32>
    %7 = arith.addf %3, %6 : vector<512x128xf32>
    %c0_6 = arith.constant 0 : index
    %c0_7 = arith.constant 0 : index
    %8 = vector.load %arg9[%c0_6, %c0_7] : memref<512x128xf32, #tpu.memory_space<vmem>>, vector<512x128xf32>
    tpu.vector_store %arg9[%c0_6, %c0_7], %7 {strides = array<i32>} : memref<512x128xf32, #tpu.memory_space<vmem>>, vector<512x128xf32>,
    %c0_i32_8 = arith.constant 0 : i32
    %9 = arith.cmpi eq, %arg2, %c0_i32_8 : i32
    %10 = arith.extui %9 : i1 to i32
    %c0_i32_9 = arith.constant 0 : i32
    %11 = arith.cmpi ne, %10, %c0_i32_9 : i32
    scf.if %11 {
      %c0_10 = arith.constant 0 : index
      %c0_11 = arith.constant 0 : index
      %12 = vector.load %arg9[%c0_10, %c0_11] : memref<512x128xf32, #tpu.memory_space<vmem>>, vector<512x128xf32>
      %c0_12 = arith.constant 0 : index
      %c0_13 = arith.constant 0 : index
      %13 = vector.load %arg5[%c0_12, %c0_13] : memref<1x128xf32, #tpu.memory_space<vmem>>, vector<1x128xf32>
      %14 = vector.broadcast %13 : vector<1x128xf32> to vector<512x128xf32>
      %15 = arith.addf %12, %14 : vector<512x128xf32>
      %c0_14 = arith.constant 0 : index
      %16 = memref.load %arg7[%c0_14] : memref<1xf32, #tpu.memory_space<smem>>
      %c0_15 = arith.constant 0 : index
      %c0_16 = arith.constant 0 : index
      %17 = vector.load %arg6[%c0_15, %c0_16] : memref<512x128xf32, #tpu.memory_space<vmem>>, vector<512x128xf32>
      %18 = vector.broadcast %16 : f32 to vector<512x128xf32>
      %19 = arith.mulf %18, %17 : vector<512x128xf32>
      %20 = arith.addf %15, %19 : vector<512x128xf32>
      %cst_17 = arith.constant 0.000000e+00 : f32
      %21 = vector.broadcast %cst_17 : f32 to vector<512x128xf32>
      %22 = arith.maximumf %20, %21 : vector<512x128xf32>
      %c0_18 = arith.constant 0 : index
      %c0_19 = arith.constant 0 : index
      %23 = vector.load %arg8[%c0_18, %c0_19] : memref<512x128xf32, #tpu.memory_space<vmem>>, vector<512x128xf32>
      tpu.vector_store %arg8[%c0_18, %c0_19], %22 {strides = array<i32>} : memref<512x128xf32, #tpu.memory_space<vmem>>, vector<512x128xf32>,
    } else {
    }
    return
  }
  func.func @transform_0(%arg0: i32, %arg1: i32, %arg2: i32) -> (i32, i32) {
    %c0_i32 = arith.constant 0 : i32
    return %arg0, %arg2 : i32, i32
  }
  func.func @transform_1(%arg0: i32, %arg1: i32, %arg2: i32) -> (i32, i32) {
    %c0_i32 = arith.constant 0 : i32
    %c0_i32_0 = arith.constant 0 : i32
    %c0_i32_1 = arith.constant 0 : i32
    return %c0_i32, %c0_i32_0 : i32, i32
  }
  func.func @transform_2(%arg0: i32, %arg1: i32, %arg2: i32) -> (i32, i32) {
    %c0_i32 = arith.constant 0 : i32
    %c0_i32_0 = arith.constant 0 : i32
    %c0_i32_1 = arith.constant 0 : i32
    return %c0_i32, %c0_i32_0 : i32, i32
  }
  func.func @transform_3(%arg0: i32, %arg1: i32, %arg2: i32) -> (i32, i32) {
    %c0_i32 = arith.constant 0 : i32
    return %arg0, %arg1 : i32, i32
  }
  func.func @transform_4(%arg0: i32, %arg1: i32, %arg2: i32) -> i32 {
    %c0_i32 = arith.constant 0 : i32
    %c0_i32_0 = arith.constant 0 : i32
    return %c0_i32 : i32
  }
  func.func @transform_5(%arg0: i32, %arg1: i32, %arg2: i32) -> (i32, i32) {
    %c0_i32 = arith.constant 0 : i32
    return %arg0, %arg1 : i32, i32
  }
}

module attributes {stable_mosaic.version = 11 : i64} {
  func.func @_conv_gemm_kernel_residual(%arg0: i32, %arg1: i32, %arg2: i32, %arg3: memref<512x128xbf16, #tpu.memory_space<vmem>>, %arg4: memref<128x128xbf16, #tpu.memory_space<vmem>>, %arg5: memref<1x128xf32, #tpu.memory_space<vmem>>, %arg6: memref<512x128xf32, #tpu.memory_space<vmem>>, %arg7: memref<1xf32, #tpu.memory_space<smem>>, %arg8: memref<512x128xf32, #tpu.memory_space<vmem>>, %arg9: memref<512x128xf32, #tpu.memory_space<vmem>>) attributes {dimension_semantics = [#tpu.dimension_semantics<parallel>, #tpu.dimension_semantics<parallel>, #tpu.dimension_semantics<arbitrary>], iteration_bounds = array<i64: 1, 1, 1>, scalar_prefetch = 0 : i64, scratch_operands = 1 : i64, tpu.core_type = #tpu.core_type<tc>, window_params = [{transform_indices = @transform_0, window_bounds = array<i64: 512, 128>}, {pipeline_mode = #tpu.pipeline_mode<synchronous>, transform_indices = @transform_1, window_bounds = array<i64: 128, 128>}, {pipeline_mode = #tpu.pipeline_mode<synchronous>, transform_indices = @transform_2, window_bounds = array<i64: 1, 128>}, {transform_indices = @transform_3, window_bounds = array<i64: 512, 128>}, {transform_indices = @transform_4, window_bounds = array<i64: 1>}, {transform_indices = @transform_5, window_bounds = array<i64: 512, 128>}]} {
    %c0_i32 = arith.constant 0 : i32
    %0 = arith.cmpi eq, %arg2, %c0_i32 : i32
    %1 = arith.extui %0 : i1 to i32
    %c0_i32_0 = arith.constant 0 : i32
    %2 = arith.cmpi ne, %1, %c0_i32_0 : i32
    scf.if %2 {
      %cst_10 = arith.constant 0.000000e+00 : f32
      %12 = vector.broadcast %cst_10 : f32 to vector<512x128xf32>
      %c0_11 = arith.constant 0 : index
      %c0_12 = arith.constant 0 : index
      %13 = vector.load %arg9[%c0_11, %c0_12] : memref<512x128xf32, #tpu.memory_space<vmem>>, vector<512x128xf32>
      tpu.vector_store %arg9[%c0_11, %c0_12], %12 {strides = array<i32>} : memref<512x128xf32, #tpu.memory_space<vmem>>, vector<512x128xf32>,
    } else {
    }
    %c0 = arith.constant 0 : index
    %c0_1 = arith.constant 0 : index
    %3 = vector.load %arg9[%c0, %c0_1] : memref<512x128xf32, #tpu.memory_space<vmem>>, vector<512x128xf32>
    %c0_2 = arith.constant 0 : index
    %c0_3 = arith.constant 0 : index
    %4 = vector.load %arg3[%c0_2, %c0_3] : memref<512x128xbf16, #tpu.memory_space<vmem>>, vector<512x128xbf16>
    %c0_4 = arith.constant 0 : index
    %c0_5 = arith.constant 0 : index
    %5 = vector.load %arg4[%c0_4, %c0_5] : memref<128x128xbf16, #tpu.memory_space<vmem>>, vector<128x128xbf16>
    %cst = arith.constant dense<0.000000e+00> : vector<512x128xf32>
    %6 = tpu.matmul %4, %5, %cst {dimension_numbers = #tpu.dot_dimension_numbers<[1], [0], [0], [1], [0, 0, 1, 1], [], []>} : vector<512x128xbf16>, vector<128x128xbf16>, vector<512x128xf32> -> vector<512x128xf32>
    %7 = arith.addf %3, %6 : vector<512x128xf32>
    %c0_6 = arith.constant 0 : index
    %c0_7 = arith.constant 0 : index
    %8 = vector.load %arg9[%c0_6, %c0_7] : memref<512x128xf32, #tpu.memory_space<vmem>>, vector<512x128xf32>
    tpu.vector_store %arg9[%c0_6, %c0_7], %7 {strides = array<i32>} : memref<512x128xf32, #tpu.memory_space<vmem>>, vector<512x128xf32>,
    %c0_i32_8 = arith.constant 0 : i32
    %9 = arith.cmpi eq, %arg2, %c0_i32_8 : i32
    %10 = arith.extui %9 : i1 to i32
    %c0_i32_9 = arith.constant 0 : i32
    %11 = arith.cmpi ne, %10, %c0_i32_9 : i32
    scf.if %11 {
      %c0_10 = arith.constant 0 : index
      %c0_11 = arith.constant 0 : index
      %12 = vector.load %arg9[%c0_10, %c0_11] : memref<512x128xf32, #tpu.memory_space<vmem>>, vector<512x128xf32>
      %c0_12 = arith.constant 0 : index
      %c0_13 = arith.constant 0 : index
      %13 = vector.load %arg5[%c0_12, %c0_13] : memref<1x128xf32, #tpu.memory_space<vmem>>, vector<1x128xf32>
      %14 = vector.broadcast %13 : vector<1x128xf32> to vector<512x128xf32>
      %15 = arith.addf %12, %14 : vector<512x128xf32>
      %c0_14 = arith.constant 0 : index
      %16 = memref.load %arg7[%c0_14] : memref<1xf32, #tpu.memory_space<smem>>
      %c0_15 = arith.constant 0 : index
      %c0_16 = arith.constant 0 : index
      %17 = vector.load %arg6[%c0_15, %c0_16] : memref<512x128xf32, #tpu.memory_space<vmem>>, vector<512x128xf32>
      %18 = vector.broadcast %16 : f32 to vector<512x128xf32>
      %19 = arith.mulf %18, %17 : vector<512x128xf32>
      %20 = arith.addf %15, %19 : vector<512x128xf32>
      %cst_17 = arith.constant 0.000000e+00 : f32
      %21 = vector.broadcast %cst_17 : f32 to vector<512x128xf32>
      %22 = arith.maximumf %20, %21 : vector<512x128xf32>
      %c0_18 = arith.constant 0 : index
      %c0_19 = arith.constant 0 : index
      %23 = vector.load %arg8[%c0_18, %c0_19] : memref<512x128xf32, #tpu.memory_space<vmem>>, vector<512x128xf32>
      tpu.vector_store %arg8[%c0_18, %c0_19], %22 {strides = array<i32>} : memref<512x128xf32, #tpu.memory_space<vmem>>, vector<512x128xf32>,
    } else {
    }
    return
  }
  func.func @transform_0(%arg0: i32, %arg1: i32, %arg2: i32) -> (i32, i32) {
    %c0_i32 = arith.constant 0 : i32
    return %arg0, %arg2 : i32, i32
  }
  func.func @transform_1(%arg0: i32, %arg1: i32, %arg2: i32) -> (i32, i32) {
    %c0_i32 = arith.constant 0 : i32
    %c0_i32_0 = arith.constant 0 : i32
    %c0_i32_1 = arith.constant 0 : i32
    return %c0_i32, %c0_i32_0 : i32, i32
  }
  func.func @transform_2(%arg0: i32, %arg1: i32, %arg2: i32) -> (i32, i32) {
    %c0_i32 = arith.constant 0 : i32
    %c0_i32_0 = arith.constant 0 : i32
    %c0_i32_1 = arith.constant 0 : i32
    return %c0_i32, %c0_i32_0 : i32, i32
  }
  func.func @transform_3(%arg0: i32, %arg1: i32, %arg2: i32) -> (i32, i32) {
    %c0_i32 = arith.constant 0 : i32
    return %arg0, %arg1 : i32, i32
  }
  func.func @transform_4(%arg0: i32, %arg1: i32, %arg2: i32) -> i32 {
    %c0_i32 = arith.constant 0 : i32
    %c0_i32_0 = arith.constant 0 : i32
    return %c0_i32 : i32
  }
  func.func @transform_5(%arg0: i32, %arg1: i32, %arg2: i32) -> (i32, i32) {
    %c0_i32 = arith.constant 0 : i32
    return %arg0, %arg1 : i32, i32
  }
}

</mosaic_0001>

<bundles_post_ra>
// kernel: tpu_custom_call.1
= control target key start
LH: loop header
LB: loop body
LE: loop exit
PB: predicated region body
PF: predicated region fallthrough
CT: control target
= control target key end

     0   :  { %11 = vsyncpa [#allocation5], 0  ;;  %s1824_s0 = inlined_call_operand.hbm [shape: bf16[512,128], index: 0, kind: input, shape index: {}]   ;;  %s1825_s1 = inlined_call_operand.hbm [shape: bf16[128,128], index: 1, kind: input, shape index: {}]   ;;  %s1826_s2 = inlined_call_operand.vmem [shape: f32[1,128], index: 2, kind: input, shape index: {}]   ;;  %s1827_s3 = inlined_call_operand.hbm [shape: f32[512,128], index: 3, kind: input, shape index: {}]   ;;  %s1828_s4 = inlined_call_operand.<no memory space> [shape: f32[1], index: 4, kind: input, shape index: {}]   ;;  %s1829_s5 = inlined_call_operand.hbm [shape: f32[512,128], index: 5, kind: output, shape index: {}]  }
   0x1   :  { %12 = vsyncpa [#allocation8], 0 }
   0x2   :  { %13 = vsyncpa [#allocation6], 0  ;;  %s31_s20 = sshll.u32 %s1825_s1, 4  ;;  %s1630_s21 = smov [#allocation7]   ;;  %s32_s20 = int_to_ptr.hbm [resolvable:$true] %s31_s20 }
   0x3   :  { %s33_s22 = sshll.u32 %s1630_s21, 4  ;;  %s18_s25 = sshll.u32 %s1824_s0, 4  ;;  %s34_s22 = int_to_ptr.vmem [resolvable:$true] %s33_s22  ;;  %s19_s25 = int_to_ptr.hbm [resolvable:$true] %s18_s25 }
   0x4   :  { %s1631_s26 = smov 64   ;;  %s1632_s27 = smov 4  }
   0x5   :  { %39 = dma.hbm_to_vmem [thread:$0]  %s32_s20, 1024, %s34_s22, [#allocation8], %s1631_s26, %s1631_s26, %s1632_s27  }
   0x6   :  { %s1633_s28 = smov [#allocation4]   ;;  %s46_s7 = sshll.u32 %s1827_s3, 4  ;;  %s47_s7 = int_to_ptr.hbm [resolvable:$true] %s46_s7 }
   0x7   :  { %s20_s29 = sshll.u32 %s1633_s28, 4  ;;  %s1634_s1 = smov [#allocation9]   ;;  %s21_s29 = int_to_ptr.vmem [resolvable:$true] %s20_s29 }
   0x8   :  { %26 = dma.hbm_to_vmem [thread:$0]  %s19_s25, 4096, %s21_s29, [#allocation5], %s1631_s26, %s1631_s26, %s1632_s27  }
   0x9   :  { %s48_s8 = sshll.u32 %s1634_s1, 4  ;;  %s1635_s9 = smov 128   ;;  %s49_s8 = int_to_ptr.vmem [resolvable:$true] %s48_s8 }
   0xa   :  { %s1636_s10 = smov 8  }
   0xb   :  { %54 = dma.hbm_to_vmem [thread:$0]  %s47_s7, 8192, %s49_s8, [#allocation8], %s1635_s9, %s1635_s9, %s1636_s10  }
   0xc   :  { %1624 = dma.done.wait [#allocation5], 4096  }
   0xd   :  { %1625 = vsyncadd [#allocation5], 4294963200 }
   0xe   :  { %1626 = dma.done.wait [#allocation8], 9216  }
   0xf   :  { %1627 = vsyncadd [#allocation8], 4294958080  ;;  %v1494_v0 = vld [vmem:[#allocation7 + $0x38] sm:$0xff]  ;;  %v1493_v1 = vld [vmem:[#allocation7 + $0x30] sm:$0xff]  ;;  %v1683_v41 = vstv %s1828_s4  ;;  %s1281_s15 = sshll.u32 %s1829_s5, 4  ;;  %s1282_s15 = int_to_ptr.hbm [resolvable:$true] %s1281_s15 }
  0x10   :  { %521 = vmatpush.bf16.msra.mxu0 %v1494_v0  ;;  %1495 = vmatpush.bf16.msra.mxu1 %v1494_v0  ;;  %v1492_v2 = vld [vmem:[#allocation7 + $0x28] sm:$0xff]  ;;  %v1491_v3 = vld [vmem:[#allocation7 + $0x20] sm:$0xff]  ;;  %v1490_v4 = vld [vmem:[#allocation7 + $0x18] sm:$0xff] }
  0x11   :  { %1496 = vmatpush.bf16.msra.mxu2 %v1494_v0  ;;  %1497 = vmatpush.bf16.msra.mxu3 %v1494_v0  ;;  %v1489_v5 = vld [vmem:[#allocation7 + $0x10] sm:$0xff]  ;;  %v1488_v6 = vld [vmem:[#allocation7 + $0x8] sm:$0xff]  ;;  %v1487_v7 = vld [vmem:[#allocation7] sm:$0xff] }
  0x12   :  { %v1455_v8 = vld [vmem:[#allocation4] sm:$0xff]  ;;  %v1456_v12 = vld [vmem:[#allocation4 + $0x8] sm:$0xff]  ;;  %v1457_v16 = vld [vmem:[#allocation4 + $0x10] sm:$0xff] }
  0x13   :  { %v1463_v9 = vld [vmem:[#allocation4 + $0x40] sm:$0xff]  ;;  %v1464_v13 = vld [vmem:[#allocation4 + $0x48] sm:$0xff]  ;;  %v1465_v17 = vld [vmem:[#allocation4 + $0x50] sm:$0xff] }
  0x14   :  { %522 = vmatpush.bf16.msra.mxu0 %v1493_v1  ;;  %1498 = vmatpush.bf16.msra.mxu1 %v1493_v1  ;;  %v1471_v10 = vld [vmem:[#allocation4 + $0x80] sm:$0xff]  ;;  %v1472_v14 = vld [vmem:[#allocation4 + $0x88] sm:$0xff]  ;;  %v1473_v18 = vld [vmem:[#allocation4 + $0x90] sm:$0xff] }
  0x15   :  { %1499 = vmatpush.bf16.msra.mxu2 %v1493_v1  ;;  %1500 = vmatpush.bf16.msra.mxu3 %v1493_v1  ;;  %v1479_v11 = vld [vmem:[#allocation4 + $0xc0] sm:$0xff]  ;;  %v1480_v15 = vld [vmem:[#allocation4 + $0xc8] sm:$0xff]  ;;  %v1481_v19 = vld [vmem:[#allocation4 + $0xd0] sm:$0xff] }
  0x16   :  { %v1458_v20 = vld [vmem:[#allocation4 + $0x18] sm:$0xff]  ;;  %v1459_v24 = vld [vmem:[#allocation4 + $0x20] sm:$0xff]  ;;  %v1460_v28 = vld [vmem:[#allocation4 + $0x28] sm:$0xff] }
  0x17   :  { %v1466_v21 = vld [vmem:[#allocation4 + $0x58] sm:$0xff]  ;;  %v1467_v25 = vld [vmem:[#allocation4 + $0x60] sm:$0xff]  ;;  %v1468_v29 = vld [vmem:[#allocation4 + $0x68] sm:$0xff] }
  0x18   :  { %523 = vmatpush.bf16.msra.mxu0 %v1492_v2  ;;  %1501 = vmatpush.bf16.msra.mxu1 %v1492_v2  ;;  %v1474_v22 = vld [vmem:[#allocation4 + $0x98] sm:$0xff]  ;;  %v1475_v26 = vld [vmem:[#allocation4 + $0xa0] sm:$0xff]  ;;  %v1476_v30 = vld [vmem:[#allocation4 + $0xa8] sm:$0xff] }
  0x19   :  { %1502 = vmatpush.bf16.msra.mxu2 %v1492_v2  ;;  %1503 = vmatpush.bf16.msra.mxu3 %v1492_v2  ;;  %v1482_v23 = vld [vmem:[#allocation4 + $0xd8] sm:$0xff]  ;;  %v1483_v27 = vld [vmem:[#allocation4 + $0xe0] sm:$0xff]  ;;  %v1484_v31 = vld [vmem:[#allocation4 + $0xe8] sm:$0xff] }
  0x1a   :  { %v1461_v32 = vld [vmem:[#allocation4 + $0x30] sm:$0xff]  ;;  %v1462_v36 = vld [vmem:[#allocation4 + $0x38] sm:$0xff]  ;;  %v954_v40 = vld [vmem:[#allocation9] sm:$0xff] }
  0x1b   :  { %v1469_v33 = vld [vmem:[#allocation4 + $0x70] sm:$0xff]  ;;  %v1470_v37 = vld [vmem:[#allocation4 + $0x78] sm:$0xff]  ;;  %v970_v42 = vld [vmem:[#allocation9 + $0x80] sm:$0xff]  ;;  %v1019_v44 = vmul.f32 %v1683_v41, %v954_v40 }
  0x1c   :  { %524 = vmatpush.bf16.msra.mxu0 %v1491_v3  ;;  %1504 = vmatpush.bf16.msra.mxu1 %v1491_v3  ;;  %v1477_v34 = vld [vmem:[#allocation4 + $0xb0] sm:$0xff]  ;;  %v1478_v38 = vld [vmem:[#allocation4 + $0xb8] sm:$0xff]  ;;  %v1688_v43 = vld [vmem:[%s1826_s2] ss:$0 sm:$0xff]  ;;  %v1035_v45 = vmul.f32 %v1683_v41, %v970_v42  ;;  %s1637_s2 = smov [#allocation10]  }
  0x1d   :  { %1505 = vmatpush.bf16.msra.mxu2 %v1491_v3  ;;  %1506 = vmatpush.bf16.msra.mxu3 %v1491_v3  ;;  %v1485_v35 = vld [vmem:[#allocation4 + $0xf0] sm:$0xff]  ;;  %v1486_v39 = vld [vmem:[#allocation4 + $0xf8] sm:$0xff]  ;;  %v986_v52 = vld [vmem:[#allocation9 + $0x100] sm:$0xff]  ;;  %s1279_s4 = sshll.u32 %s1637_s2, 4  ;;  %s1280_s4 = int_to_ptr.vmem [resolvable:$true] %s1279_s4 }
  0x1e   :  { %v1002_v53 = vld [vmem:[#allocation9 + $0x180] sm:$0xff]  ;;  %v955_v54 = vld [vmem:[#allocation9 + $0x8] sm:$0xff]  ;;  %v1051_v58 = vmul.f32 %v1683_v41, %v986_v52 }
  0x1f   :  { %v971_v55 = vld [vmem:[#allocation9 + $0x88] sm:$0xff]  ;;  %v1067_v59 = vmul.f32 %v1683_v41, %v1002_v53  ;;  %v1020_v62 = vmul.f32 %v1683_v41, %v955_v54 }
  0x20   :  { %525 = vmatpush.bf16.msra.mxu0 %v1490_v4  ;;  %1507 = vmatpush.bf16.msra.mxu1 %v1490_v4  ;;  %v1036_v63 = vmul.f32 %v1683_v41, %v971_v55 }
  0x21   :  { %1508 = vmatpush.bf16.msra.mxu2 %v1490_v4  ;;  %1509 = vmatpush.bf16.msra.mxu3 %v1490_v4 }
  0x24   :  { %526 = vmatpush.bf16.msra.mxu0 %v1489_v5  ;;  %1510 = vmatpush.bf16.msra.mxu1 %v1489_v5 }
  0x25   :  { %1511 = vmatpush.bf16.msra.mxu2 %v1489_v5  ;;  %1512 = vmatpush.bf16.msra.mxu3 %v1489_v5 }
  0x28   :  { %527 = vmatpush.bf16.msra.mxu0 %v1488_v6  ;;  %1513 = vmatpush.bf16.msra.mxu1 %v1488_v6 }
  0x29   :  { %1514 = vmatpush.bf16.msra.mxu2 %v1488_v6  ;;  %1515 = vmatpush.bf16.msra.mxu3 %v1488_v6 }
  0x2c   :  { %528 = vmatpush.bf16.msra.mxu0 %v1487_v7  ;;  %1516 = vmatpush.bf16.msra.mxu1 %v1487_v7 }
  0x2d   :  { %1517 = vmatpush.bf16.msra.mxu2 %v1487_v7  ;;  %1518 = vmatpush.bf16.msra.mxu3 %v1487_v7 }
  0x2f   :  { %529 = vmatmul.bf16.vlgmr.msra.gmra.mxu0 %v1455_v8  ;;  %569 = vmatmul.bf16.vlgmr.msra.gmra.mxu1 %v1463_v9 }
  0x30   :  { %609 = vmatmul.bf16.vlgmr.msra.gmra.mxu2 %v1471_v10  ;;  %649 = vmatmul.bf16.vlgmr.msra.gmra.mxu3 %v1479_v11  ;;  %v987_v10 = vld [vmem:[#allocation9 + $0x108] sm:$0xff] }
  0x31   :  { %v1003_v11 = vld [vmem:[#allocation9 + $0x188] sm:$0xff] }
  0x3f   :  { %534 = vmatmul.bf16.gmra.mxu0 %v1456_v12  ;;  %574 = vmatmul.bf16.gmra.mxu1 %v1464_v13 }
  0x40   :  { %614 = vmatmul.bf16.gmra.mxu2 %v1472_v14  ;;  %654 = vmatmul.bf16.gmra.mxu3 %v1480_v15  ;;  %v956_v14 = vld [vmem:[#allocation9 + $0x10] sm:$0xff] }
  0x41   :  { %v972_v15 = vld [vmem:[#allocation9 + $0x90] sm:$0xff] }
  0x4f   :  { %539 = vmatmul.bf16.gmra.mxu0 %v1457_v16  ;;  %579 = vmatmul.bf16.gmra.mxu1 %v1465_v17 }
  0x50   :  { %619 = vmatmul.bf16.gmra.mxu2 %v1473_v18  ;;  %659 = vmatmul.bf16.gmra.mxu3 %v1481_v19  ;;  %v1052_v18 = vmul.f32 %v1683_v41, %v987_v10  ;;  %v1068_v19 = vmul.f32 %v1683_v41, %v1003_v11 }
  0x5f   :  { %544 = vmatmul.bf16.gmra.mxu0 %v1458_v20  ;;  %584 = vmatmul.bf16.gmra.mxu1 %v1466_v21 }
  0x60   :  { %624 = vmatmul.bf16.gmra.mxu2 %v1474_v22  ;;  %664 = vmatmul.bf16.gmra.mxu3 %v1482_v23  ;;  %v1021_v22 = vmul.f32 %v1683_v41, %v956_v14  ;;  %v1037_v23 = vmul.f32 %v1683_v41, %v972_v15 }
  0x6f   :  { %549 = vmatmul.bf16.gmra.mxu0 %v1459_v24  ;;  %589 = vmatmul.bf16.gmra.mxu1 %v1467_v25 }
  0x70   :  { %629 = vmatmul.bf16.gmra.mxu2 %v1475_v26  ;;  %669 = vmatmul.bf16.gmra.mxu3 %v1483_v27 }
  0x7f   :  { %554 = vmatmul.bf16.gmra.mxu0 %v1460_v28  ;;  %594 = vmatmul.bf16.gmra.mxu1 %v1468_v29 }
  0x80   :  { %634 = vmatmul.bf16.gmra.mxu2 %v1476_v30  ;;  %674 = vmatmul.bf16.gmra.mxu3 %v1484_v31 }
  0x8f   :  { %559 = vmatmul.bf16.gmra.mxu0 %v1461_v32  ;;  %599 = vmatmul.bf16.gmra.mxu1 %v1469_v33 }
  0x90   :  { %639 = vmatmul.bf16.gmra.mxu2 %v1477_v34  ;;  %679 = vmatmul.bf16.gmra.mxu3 %v1485_v35  ;;  %v988_v34 = vld [vmem:[#allocation9 + $0x110] sm:$0xff] }
  0x91   :  { %v1004_v35 = vld [vmem:[#allocation9 + $0x190] sm:$0xff] }
  0x9f   :  { %564 = vmatmul.bf16.gmra.mxu0 %v1462_v36  ;;  %604 = vmatmul.bf16.gmra.mxu1 %v1470_v37 }
  0xa0   :  { %644 = vmatmul.bf16.gmra.mxu2 %v1478_v38  ;;  %684 = vmatmul.bf16.gmra.mxu3 %v1486_v39  ;;  %v957_v38 = vld [vmem:[#allocation9 + $0x18] sm:$0xff] }
  0xa1   :  { %v973_v39 = vld [vmem:[#allocation9 + $0x98] sm:$0xff] }
  0xac   :  { %v530_v46 = vpop.f32.mrf.mxu0  ;;  %v570_v47 = vpop.f32.mrf.mxu1 }
  0xad   :  { %v889_v48 = vadd.f32 %v1688_v43, %v530_v46  ;;  %v905_v49 = vadd.f32 %v1688_v43, %v570_v47 }
  0xaf   :  { %v1083_v50 = vadd.f32 %v1019_v44, %v889_v48  ;;  %v1099_v51 = vadd.f32 %v1035_v45, %v905_v49  ;;  %v1053_v44 = vmul.f32 %v1683_v41, %v988_v34  ;;  %v1069_v45 = vmul.f32 %v1683_v41, %v1004_v35 }
  0xb0   :  { %v1022_v48 = vmul.f32 %v1683_v41, %v957_v38  ;;  %v1038_v49 = vmul.f32 %v1683_v41, %v973_v39 }
  0xb1   :  { %v1147_v56 = vmax.f32 %v1083_v50, 0.0  ;;  %v1163_v57 = vmax.f32 %v1099_v51, 0.0 }
  0xb3   :  { %1211 = vst [vmem:[#allocation10] sm:$0xff] %v1147_v56  ;;  %v610_v60 = vpop.f32.mrf.mxu2  ;;  %v650_v61 = vpop.f32.mrf.mxu3 }
  0xb4   :  { %1227 = vst [vmem:[#allocation10 + $0x80] sm:$0xff] %v1163_v57  ;;  %v921_v0 = vadd.f32 %v1688_v43, %v610_v60  ;;  %v937_v1 = vadd.f32 %v1688_v43, %v650_v61  ;;  %v532_v2 = vpop.f32.mrf.mxu0  ;;  %v572_v3 = vpop.f32.mrf.mxu1  ;;  %v989_v60 = vld [vmem:[#allocation9 + $0x118] sm:$0xff] }
  0xb5   :  { %v890_v4 = vadd.f32 %v1688_v43, %v532_v2  ;;  %v906_v5 = vadd.f32 %v1688_v43, %v572_v3  ;;  %v1005_v61 = vld [vmem:[#allocation9 + $0x198] sm:$0xff] }
  0xb6   :  { %v1115_v6 = vadd.f32 %v1051_v58, %v921_v0  ;;  %v1131_v7 = vadd.f32 %v1067_v59, %v937_v1  ;;  %v958_v0 = vld [vmem:[#allocation9 + $0x20] sm:$0xff] }
  0xb7   :  { %v1084_v8 = vadd.f32 %v1020_v62, %v890_v4  ;;  %v1100_v9 = vadd.f32 %v1036_v63, %v906_v5  ;;  %v974_v1 = vld [vmem:[#allocation9 + $0xa0] sm:$0xff]  ;;  %v1054_v4 = vmul.f32 %v1683_v41, %v989_v60  ;;  %v1070_v5 = vmul.f32 %v1683_v41, %v1005_v61 }
  0xb8   :  { %v1179_v12 = vmax.f32 %v1115_v6, 0.0  ;;  %v1195_v13 = vmax.f32 %v1131_v7, 0.0 }
  0xb9   :  { %v1148_v16 = vmax.f32 %v1084_v8, 0.0  ;;  %v1164_v17 = vmax.f32 %v1100_v9, 0.0  ;;  %v1023_v8 = vmul.f32 %v1683_v41, %v958_v0  ;;  %v1039_v9 = vmul.f32 %v1683_v41, %v974_v1 }
  0xba   :  { %1243 = vst [vmem:[#allocation10 + $0x100] sm:$0xff] %v1179_v12 }
  0xbb   :  { %1259 = vst [vmem:[#allocation10 + $0x180] sm:$0xff] %v1195_v13  ;;  %v612_v20 = vpop.f32.mrf.mxu2  ;;  %v652_v21 = vpop.f32.mrf.mxu3 }
  0xbc   :  { %1212 = vst [vmem:[#allocation10 + $0x8] sm:$0xff] %v1148_v16  ;;  %v922_v24 = vadd.f32 %v1688_v43, %v612_v20  ;;  %v938_v25 = vadd.f32 %v1688_v43, %v652_v21  ;;  %v535_v26 = vpop.f32.mrf.mxu0  ;;  %v575_v27 = vpop.f32.mrf.mxu1  ;;  %v990_v20 = vld [vmem:[#allocation9 + $0x120] sm:$0xff] }
  0xbd   :  { %1228 = vst [vmem:[#allocation10 + $0x88] sm:$0xff] %v1164_v17  ;;  %v891_v28 = vadd.f32 %v1688_v43, %v535_v26  ;;  %v907_v29 = vadd.f32 %v1688_v43, %v575_v27  ;;  %v1006_v21 = vld [vmem:[#allocation9 + $0x1a0] sm:$0xff] }
  0xbe   :  { %v1116_v30 = vadd.f32 %v1052_v18, %v922_v24  ;;  %v1132_v31 = vadd.f32 %v1068_v19, %v938_v25  ;;  %v959_v24 = vld [vmem:[#allocation9 + $0x28] sm:$0xff] }
  0xbf   :  { %v1085_v32 = vadd.f32 %v1021_v22, %v891_v28  ;;  %v1101_v33 = vadd.f32 %v1037_v23, %v907_v29  ;;  %v975_v25 = vld [vmem:[#allocation9 + $0xa8] sm:$0xff]  ;;  %v1055_v28 = vmul.f32 %v1683_v41, %v990_v20  ;;  %v1071_v29 = vmul.f32 %v1683_v41, %v1006_v21 }
  0xc0   :  { %v1180_v36 = vmax.f32 %v1116_v30, 0.0  ;;  %v1196_v37 = vmax.f32 %v1132_v31, 0.0 }
  0xc1   :  { %v1149_v40 = vmax.f32 %v1085_v32, 0.0  ;;  %v1165_v42 = vmax.f32 %v1101_v33, 0.0  ;;  %v1024_v32 = vmul.f32 %v1683_v41, %v959_v24  ;;  %v1040_v33 = vmul.f32 %v1683_v41, %v975_v25 }
  0xc2   :  { %1244 = vst [vmem:[#allocation10 + $0x108] sm:$0xff] %v1180_v36 }
  0xc3   :  { %1260 = vst [vmem:[#allocation10 + $0x188] sm:$0xff] %v1196_v37  ;;  %v615_v46 = vpop.f32.mrf.mxu2  ;;  %v655_v47 = vpop.f32.mrf.mxu3 }
  0xc4   :  { %1213 = vst [vmem:[#allocation10 + $0x10] sm:$0xff] %v1149_v40  ;;  %v923_v50 = vadd.f32 %v1688_v43, %v615_v46  ;;  %v939_v51 = vadd.f32 %v1688_v43, %v655_v47  ;;  %v537_v52 = vpop.f32.mrf.mxu0  ;;  %v577_v53 = vpop.f32.mrf.mxu1  ;;  %v991_v46 = vld [vmem:[#allocation9 + $0x128] sm:$0xff] }
  0xc5   :  { %1229 = vst [vmem:[#allocation10 + $0x90] sm:$0xff] %v1165_v42  ;;  %v892_v54 = vadd.f32 %v1688_v43, %v537_v52  ;;  %v908_v55 = vadd.f32 %v1688_v43, %v577_v53  ;;  %v1007_v47 = vld [vmem:[#allocation9 + $0x1a8] sm:$0xff] }
  0xc6   :  { %v1117_v56 = vadd.f32 %v1053_v44, %v923_v50  ;;  %v1133_v57 = vadd.f32 %v1069_v45, %v939_v51  ;;  %v960_v50 = vld [vmem:[#allocation9 + $0x30] sm:$0xff] }
  0xc7   :  { %v1086_v58 = vadd.f32 %v1022_v48, %v892_v54  ;;  %v1102_v59 = vadd.f32 %v1038_v49, %v908_v55  ;;  %v976_v51 = vld [vmem:[#allocation9 + $0xb0] sm:$0xff]  ;;  %v1056_v54 = vmul.f32 %v1683_v41, %v991_v46  ;;  %v1072_v55 = vmul.f32 %v1683_v41, %v1007_v47 }
  0xc8   :  { %v1181_v62 = vmax.f32 %v1117_v56, 0.0  ;;  %v1197_v63 = vmax.f32 %v1133_v57, 0.0 }
  0xc9   :  { %v1150_v2 = vmax.f32 %v1086_v58, 0.0  ;;  %v1166_v3 = vmax.f32 %v1102_v59, 0.0  ;;  %v1025_v58 = vmul.f32 %v1683_v41, %v960_v50  ;;  %v1041_v59 = vmul.f32 %v1683_v41, %v976_v51 }
  0xca   :  { %1245 = vst [vmem:[#allocation10 + $0x110] sm:$0xff] %v1181_v62 }
  0xcb   :  { %1261 = vst [vmem:[#allocation10 + $0x190] sm:$0xff] %v1197_v63  ;;  %v617_v6 = vpop.f32.mrf.mxu2  ;;  %v657_v7 = vpop.f32.mrf.mxu3 }
  0xcc   :  { %1214 = vst [vmem:[#allocation10 + $0x18] sm:$0xff] %v1150_v2  ;;  %v924_v10 = vadd.f32 %v1688_v43, %v617_v6  ;;  %v940_v11 = vadd.f32 %v1688_v43, %v657_v7  ;;  %v540_v12 = vpop.f32.mrf.mxu0  ;;  %v580_v13 = vpop.f32.mrf.mxu1  ;;  %v992_v6 = vld [vmem:[#allocation9 + $0x130] sm:$0xff] }
  0xcd   :  { %1230 = vst [vmem:[#allocation10 + $0x98] sm:$0xff] %v1166_v3  ;;  %v893_v14 = vadd.f32 %v1688_v43, %v540_v12  ;;  %v909_v15 = vadd.f32 %v1688_v43, %v580_v13  ;;  %v1008_v7 = vld [vmem:[#allocation9 + $0x1b0] sm:$0xff] }
  0xce   :  { %v1118_v16 = vadd.f32 %v1054_v4, %v924_v10  ;;  %v1134_v17 = vadd.f32 %v1070_v5, %v940_v11  ;;  %v961_v10 = vld [vmem:[#allocation9 + $0x38] sm:$0xff] }
  0xcf   :  { %v1087_v18 = vadd.f32 %v1023_v8, %v893_v14  ;;  %v1103_v19 = vadd.f32 %v1039_v9, %v909_v15  ;;  %v977_v11 = vld [vmem:[#allocation9 + $0xb8] sm:$0xff]  ;;  %v1057_v14 = vmul.f32 %v1683_v41, %v992_v6  ;;  %v1073_v15 = vmul.f32 %v1683_v41, %v1008_v7 }
  0xd0   :  { %v1182_v22 = vmax.f32 %v1118_v16, 0.0  ;;  %v1198_v23 = vmax.f32 %v1134_v17, 0.0 }
  0xd1   :  { %v1151_v26 = vmax.f32 %v1087_v18, 0.0  ;;  %v1167_v27 = vmax.f32 %v1103_v19, 0.0  ;;  %v1026_v18 = vmul.f32 %v1683_v41, %v961_v10  ;;  %v1042_v19 = vmul.f32 %v1683_v41, %v977_v11 }
  0xd2   :  { %1246 = vst [vmem:[#allocation10 + $0x118] sm:$0xff] %v1182_v22 }
  0xd3   :  { %1262 = vst [vmem:[#allocation10 + $0x198] sm:$0xff] %v1198_v23  ;;  %v620_v30 = vpop.f32.mrf.mxu2  ;;  %v660_v31 = vpop.f32.mrf.mxu3 }
  0xd4   :  { %1215 = vst [vmem:[#allocation10 + $0x20] sm:$0xff] %v1151_v26  ;;  %v925_v34 = vadd.f32 %v1688_v43, %v620_v30  ;;  %v941_v35 = vadd.f32 %v1688_v43, %v660_v31  ;;  %v542_v36 = vpop.f32.mrf.mxu0  ;;  %v582_v37 = vpop.f32.mrf.mxu1  ;;  %v993_v30 = vld [vmem:[#allocation9 + $0x138] sm:$0xff] }
  0xd5   :  { %1231 = vst [vmem:[#allocation10 + $0xa0] sm:$0xff] %v1167_v27  ;;  %v894_v38 = vadd.f32 %v1688_v43, %v542_v36  ;;  %v910_v39 = vadd.f32 %v1688_v43, %v582_v37  ;;  %v1009_v31 = vld [vmem:[#allocation9 + $0x1b8] sm:$0xff] }
  0xd6   :  { %v1119_v40 = vadd.f32 %v1055_v28, %v925_v34  ;;  %v1135_v42 = vadd.f32 %v1071_v29, %v941_v35  ;;  %v962_v34 = vld [vmem:[#allocation9 + $0x40] sm:$0xff] }
  0xd7   :  { %v1088_v44 = vadd.f32 %v1024_v32, %v894_v38  ;;  %v1104_v45 = vadd.f32 %v1040_v33, %v910_v39  ;;  %v978_v35 = vld [vmem:[#allocation9 + $0xc0] sm:$0xff]  ;;  %v1058_v38 = vmul.f32 %v1683_v41, %v993_v30  ;;  %v1074_v39 = vmul.f32 %v1683_v41, %v1009_v31 }
  0xd8   :  { %v1183_v48 = vmax.f32 %v1119_v40, 0.0  ;;  %v1199_v49 = vmax.f32 %v1135_v42, 0.0 }
  0xd9   :  { %v1152_v52 = vmax.f32 %v1088_v44, 0.0  ;;  %v1168_v53 = vmax.f32 %v1104_v45, 0.0  ;;  %v1027_v44 = vmul.f32 %v1683_v41, %v962_v34  ;;  %v1043_v45 = vmul.f32 %v1683_v41, %v978_v35 }
  0xda   :  { %1247 = vst [vmem:[#allocation10 + $0x120] sm:$0xff] %v1183_v48 }
  0xdb   :  { %1263 = vst [vmem:[#allocation10 + $0x1a0] sm:$0xff] %v1199_v49  ;;  %v622_v56 = vpop.f32.mrf.mxu2  ;;  %v662_v57 = vpop.f32.mrf.mxu3 }
  0xdc   :  { %1216 = vst [vmem:[#allocation10 + $0x28] sm:$0xff] %v1152_v52  ;;  %v926_v60 = vadd.f32 %v1688_v43, %v622_v56  ;;  %v942_v61 = vadd.f32 %v1688_v43, %v662_v57  ;;  %v545_v62 = vpop.f32.mrf.mxu0  ;;  %v585_v63 = vpop.f32.mrf.mxu1  ;;  %v994_v56 = vld [vmem:[#allocation9 + $0x140] sm:$0xff] }
  0xdd   :  { %1232 = vst [vmem:[#allocation10 + $0xa8] sm:$0xff] %v1168_v53  ;;  %v895_v0 = vadd.f32 %v1688_v43, %v545_v62  ;;  %v911_v1 = vadd.f32 %v1688_v43, %v585_v63  ;;  %v1010_v57 = vld [vmem:[#allocation9 + $0x1c0] sm:$0xff] }
  0xde   :  { %v1120_v2 = vadd.f32 %v1056_v54, %v926_v60  ;;  %v1136_v3 = vadd.f32 %v1072_v55, %v942_v61  ;;  %v963_v60 = vld [vmem:[#allocation9 + $0x48] sm:$0xff] }
  0xdf   :  { %v1089_v4 = vadd.f32 %v1025_v58, %v895_v0  ;;  %v1105_v5 = vadd.f32 %v1041_v59, %v911_v1  ;;  %v979_v61 = vld [vmem:[#allocation9 + $0xc8] sm:$0xff]  ;;  %v1059_v0 = vmul.f32 %v1683_v41, %v994_v56  ;;  %v1075_v1 = vmul.f32 %v1683_v41, %v1010_v57 }
  0xe0   :  { %v1184_v8 = vmax.f32 %v1120_v2, 0.0  ;;  %v1200_v9 = vmax.f32 %v1136_v3, 0.0 }
  0xe1   :  { %v1153_v12 = vmax.f32 %v1089_v4, 0.0  ;;  %v1169_v13 = vmax.f32 %v1105_v5, 0.0  ;;  %v1028_v4 = vmul.f32 %v1683_v41, %v963_v60  ;;  %v1044_v5 = vmul.f32 %v1683_v41, %v979_v61 }
  0xe2   :  { %1248 = vst [vmem:[#allocation10 + $0x128] sm:$0xff] %v1184_v8 }
  0xe3   :  { %1264 = vst [vmem:[#allocation10 + $0x1a8] sm:$0xff] %v1200_v9  ;;  %v625_v16 = vpop.f32.mrf.mxu2  ;;  %v665_v17 = vpop.f32.mrf.mxu3 }
  0xe4   :  { %1217 = vst [vmem:[#allocation10 + $0x30] sm:$0xff] %v1153_v12  ;;  %v927_v20 = vadd.f32 %v1688_v43, %v625_v16  ;;  %v943_v21 = vadd.f32 %v1688_v43, %v665_v17  ;;  %v547_v22 = vpop.f32.mrf.mxu0  ;;  %v587_v23 = vpop.f32.mrf.mxu1  ;;  %v995_v16 = vld [vmem:[#allocation9 + $0x148] sm:$0xff] }
  0xe5   :  { %1233 = vst [vmem:[#allocation10 + $0xb0] sm:$0xff] %v1169_v13  ;;  %v896_v24 = vadd.f32 %v1688_v43, %v547_v22  ;;  %v912_v25 = vadd.f32 %v1688_v43, %v587_v23  ;;  %v1011_v17 = vld [vmem:[#allocation9 + $0x1c8] sm:$0xff] }
  0xe6   :  { %v1121_v26 = vadd.f32 %v1057_v14, %v927_v20  ;;  %v1137_v27 = vadd.f32 %v1073_v15, %v943_v21  ;;  %v964_v20 = vld [vmem:[#allocation9 + $0x50] sm:$0xff] }
  0xe7   :  { %v1090_v28 = vadd.f32 %v1026_v18, %v896_v24  ;;  %v1106_v29 = vadd.f32 %v1042_v19, %v912_v25  ;;  %v980_v21 = vld [vmem:[#allocation9 + $0xd0] sm:$0xff]  ;;  %v1060_v24 = vmul.f32 %v1683_v41, %v995_v16  ;;  %v1076_v25 = vmul.f32 %v1683_v41, %v1011_v17 }
  0xe8   :  { %v1185_v32 = vmax.f32 %v1121_v26, 0.0  ;;  %v1201_v33 = vmax.f32 %v1137_v27, 0.0 }
  0xe9   :  { %v1154_v36 = vmax.f32 %v1090_v28, 0.0  ;;  %v1170_v37 = vmax.f32 %v1106_v29, 0.0  ;;  %v1029_v28 = vmul.f32 %v1683_v41, %v964_v20  ;;  %v1045_v29 = vmul.f32 %v1683_v41, %v980_v21 }
  0xea   :  { %1249 = vst [vmem:[#allocation10 + $0x130] sm:$0xff] %v1185_v32 }
  0xeb   :  { %1265 = vst [vmem:[#allocation10 + $0x1b0] sm:$0xff] %v1201_v33  ;;  %v627_v40 = vpop.f32.mrf.mxu2  ;;  %v667_v42 = vpop.f32.mrf.mxu3 }
  0xec   :  { %1218 = vst [vmem:[#allocation10 + $0x38] sm:$0xff] %v1154_v36  ;;  %v928_v46 = vadd.f32 %v1688_v43, %v627_v40  ;;  %v944_v47 = vadd.f32 %v1688_v43, %v667_v42  ;;  %v550_v48 = vpop.f32.mrf.mxu0  ;;  %v590_v49 = vpop.f32.mrf.mxu1  ;;  %v996_v40 = vld [vmem:[#allocation9 + $0x150] sm:$0xff] }
  0xed   :  { %1234 = vst [vmem:[#allocation10 + $0xb8] sm:$0xff] %v1170_v37  ;;  %v897_v50 = vadd.f32 %v1688_v43, %v550_v48  ;;  %v913_v51 = vadd.f32 %v1688_v43, %v590_v49  ;;  %v1012_v42 = vld [vmem:[#allocation9 + $0x1d0] sm:$0xff] }
  0xee   :  { %v1122_v52 = vadd.f32 %v1058_v38, %v928_v46  ;;  %v1138_v53 = vadd.f32 %v1074_v39, %v944_v47  ;;  %v965_v46 = vld [vmem:[#allocation9 + $0x58] sm:$0xff] }
  0xef   :  { %v1091_v54 = vadd.f32 %v1027_v44, %v897_v50  ;;  %v1107_v55 = vadd.f32 %v1043_v45, %v913_v51  ;;  %v981_v47 = vld [vmem:[#allocation9 + $0xd8] sm:$0xff]  ;;  %v1061_v50 = vmul.f32 %v1683_v41, %v996_v40  ;;  %v1077_v51 = vmul.f32 %v1683_v41, %v1012_v42 }
  0xf0   :  { %v1186_v58 = vmax.f32 %v1122_v52, 0.0  ;;  %v1202_v59 = vmax.f32 %v1138_v53, 0.0 }
  0xf1   :  { %v1155_v62 = vmax.f32 %v1091_v54, 0.0  ;;  %v1171_v63 = vmax.f32 %v1107_v55, 0.0  ;;  %v1030_v54 = vmul.f32 %v1683_v41, %v965_v46  ;;  %v1046_v55 = vmul.f32 %v1683_v41, %v981_v47 }
  0xf2   :  { %1250 = vst [vmem:[#allocation10 + $0x138] sm:$0xff] %v1186_v58 }
  0xf3   :  { %1266 = vst [vmem:[#allocation10 + $0x1b8] sm:$0xff] %v1202_v59  ;;  %v630_v2 = vpop.f32.mrf.mxu2  ;;  %v670_v3 = vpop.f32.mrf.mxu3 }
  0xf4   :  { %1219 = vst [vmem:[#allocation10 + $0x40] sm:$0xff] %v1155_v62  ;;  %v929_v6 = vadd.f32 %v1688_v43, %v630_v2  ;;  %v945_v7 = vadd.f32 %v1688_v43, %v670_v3  ;;  %v552_v8 = vpop.f32.mrf.mxu0  ;;  %v592_v9 = vpop.f32.mrf.mxu1  ;;  %v997_v2 = vld [vmem:[#allocation9 + $0x158] sm:$0xff] }
  0xf5   :  { %1235 = vst [vmem:[#allocation10 + $0xc0] sm:$0xff] %v1171_v63  ;;  %v898_v10 = vadd.f32 %v1688_v43, %v552_v8  ;;  %v914_v11 = vadd.f32 %v1688_v43, %v592_v9  ;;  %v1013_v3 = vld [vmem:[#allocation9 + $0x1d8] sm:$0xff] }
  0xf6   :  { %v1123_v12 = vadd.f32 %v1059_v0, %v929_v6  ;;  %v1139_v13 = vadd.f32 %v1075_v1, %v945_v7  ;;  %v966_v6 = vld [vmem:[#allocation9 + $0x60] sm:$0xff] }
  0xf7   :  { %v1092_v14 = vadd.f32 %v1028_v4, %v898_v10  ;;  %v1108_v15 = vadd.f32 %v1044_v5, %v914_v11  ;;  %v982_v7 = vld [vmem:[#allocation9 + $0xe0] sm:$0xff]  ;;  %v1062_v10 = vmul.f32 %v1683_v41, %v997_v2  ;;  %v1078_v11 = vmul.f32 %v1683_v41, %v1013_v3 }
  0xf8   :  { %v1187_v18 = vmax.f32 %v1123_v12, 0.0  ;;  %v1203_v19 = vmax.f32 %v1139_v13, 0.0 }
  0xf9   :  { %v1156_v22 = vmax.f32 %v1092_v14, 0.0  ;;  %v1172_v23 = vmax.f32 %v1108_v15, 0.0  ;;  %v1031_v14 = vmul.f32 %v1683_v41, %v966_v6  ;;  %v1047_v15 = vmul.f32 %v1683_v41, %v982_v7 }
  0xfa   :  { %1251 = vst [vmem:[#allocation10 + $0x140] sm:$0xff] %v1187_v18 }
  0xfb   :  { %1267 = vst [vmem:[#allocation10 + $0x1c0] sm:$0xff] %v1203_v19  ;;  %v632_v26 = vpop.f32.mrf.mxu2  ;;  %v672_v27 = vpop.f32.mrf.mxu3 }
  0xfc   :  { %1220 = vst [vmem:[#allocation10 + $0x48] sm:$0xff] %v1156_v22  ;;  %v930_v30 = vadd.f32 %v1688_v43, %v632_v26  ;;  %v946_v31 = vadd.f32 %v1688_v43, %v672_v27  ;;  %v555_v32 = vpop.f32.mrf.mxu0  ;;  %v595_v33 = vpop.f32.mrf.mxu1  ;;  %v998_v26 = vld [vmem:[#allocation9 + $0x160] sm:$0xff] }
  0xfd   :  { %1236 = vst [vmem:[#allocation10 + $0xc8] sm:$0xff] %v1172_v23  ;;  %v899_v34 = vadd.f32 %v1688_v43, %v555_v32  ;;  %v915_v35 = vadd.f32 %v1688_v43, %v595_v33  ;;  %v1014_v27 = vld [vmem:[#allocation9 + $0x1e0] sm:$0xff] }
  0xfe   :  { %v1124_v36 = vadd.f32 %v1060_v24, %v930_v30  ;;  %v1140_v37 = vadd.f32 %v1076_v25, %v946_v31  ;;  %v967_v30 = vld [vmem:[#allocation9 + $0x68] sm:$0xff] }
  0xff   :  { %v1093_v38 = vadd.f32 %v1029_v28, %v899_v34  ;;  %v1109_v39 = vadd.f32 %v1045_v29, %v915_v35  ;;  %v983_v31 = vld [vmem:[#allocation9 + $0xe8] sm:$0xff]  ;;  %v1063_v34 = vmul.f32 %v1683_v41, %v998_v26  ;;  %v1079_v35 = vmul.f32 %v1683_v41, %v1014_v27 }
 0x100   :  { %v1188_v44 = vmax.f32 %v1124_v36, 0.0  ;;  %v1204_v45 = vmax.f32 %v1140_v37, 0.0 }
 0x101   :  { %v1157_v48 = vmax.f32 %v1093_v38, 0.0  ;;  %v1173_v49 = vmax.f32 %v1109_v39, 0.0  ;;  %v1032_v38 = vmul.f32 %v1683_v41, %v967_v30  ;;  %v1048_v39 = vmul.f32 %v1683_v41, %v983_v31 }
 0x102   :  { %1252 = vst [vmem:[#allocation10 + $0x148] sm:$0xff] %v1188_v44 }
 0x103   :  { %1268 = vst [vmem:[#allocation10 + $0x1c8] sm:$0xff] %v1204_v45  ;;  %v635_v52 = vpop.f32.mrf.mxu2  ;;  %v675_v53 = vpop.f32.mrf.mxu3 }
 0x104   :  { %1221 = vst [vmem:[#allocation10 + $0x50] sm:$0xff] %v1157_v48  ;;  %v931_v56 = vadd.f32 %v1688_v43, %v635_v52  ;;  %v947_v57 = vadd.f32 %v1688_v43, %v675_v53  ;;  %v557_v58 = vpop.f32.mrf.mxu0  ;;  %v597_v59 = vpop.f32.mrf.mxu1  ;;  %v999_v52 = vld [vmem:[#allocation9 + $0x168] sm:$0xff] }
 0x105   :  { %1237 = vst [vmem:[#allocation10 + $0xd0] sm:$0xff] %v1173_v49  ;;  %v900_v60 = vadd.f32 %v1688_v43, %v557_v58  ;;  %v916_v61 = vadd.f32 %v1688_v43, %v597_v59  ;;  %v1015_v53 = vld [vmem:[#allocation9 + $0x1e8] sm:$0xff] }
 0x106   :  { %v1125_v62 = vadd.f32 %v1061_v50, %v931_v56  ;;  %v1141_v63 = vadd.f32 %v1077_v51, %v947_v57  ;;  %v968_v56 = vld [vmem:[#allocation9 + $0x70] sm:$0xff] }
 0x107   :  { %v1094_v0 = vadd.f32 %v1030_v54, %v900_v60  ;;  %v1110_v1 = vadd.f32 %v1046_v55, %v916_v61  ;;  %v984_v57 = vld [vmem:[#allocation9 + $0xf0] sm:$0xff]  ;;  %v1064_v60 = vmul.f32 %v1683_v41, %v999_v52  ;;  %v1080_v61 = vmul.f32 %v1683_v41, %v1015_v53 }
 0x108   :  { %v1189_v4 = vmax.f32 %v1125_v62, 0.0  ;;  %v1205_v5 = vmax.f32 %v1141_v63, 0.0 }
 0x109   :  { %v1158_v8 = vmax.f32 %v1094_v0, 0.0  ;;  %v1174_v9 = vmax.f32 %v1110_v1, 0.0  ;;  %v1033_v0 = vmul.f32 %v1683_v41, %v968_v56  ;;  %v1049_v1 = vmul.f32 %v1683_v41, %v984_v57 }
 0x10a   :  { %1253 = vst [vmem:[#allocation10 + $0x150] sm:$0xff] %v1189_v4 }
 0x10b   :  { %1269 = vst [vmem:[#allocation10 + $0x1d0] sm:$0xff] %v1205_v5  ;;  %v637_v12 = vpop.f32.mrf.mxu2  ;;  %v677_v13 = vpop.f32.mrf.mxu3 }
 0x10c   :  { %1222 = vst [vmem:[#allocation10 + $0x58] sm:$0xff] %v1158_v8  ;;  %v932_v16 = vadd.f32 %v1688_v43, %v637_v12  ;;  %v948_v17 = vadd.f32 %v1688_v43, %v677_v13  ;;  %v560_v18 = vpop.f32.mrf.mxu0  ;;  %v600_v19 = vpop.f32.mrf.mxu1  ;;  %v1000_v12 = vld [vmem:[#allocation9 + $0x170] sm:$0xff] }
 0x10d   :  { %1238 = vst [vmem:[#allocation10 + $0xd8] sm:$0xff] %v1174_v9  ;;  %v901_v20 = vadd.f32 %v1688_v43, %v560_v18  ;;  %v917_v21 = vadd.f32 %v1688_v43, %v600_v19  ;;  %v1016_v13 = vld [vmem:[#allocation9 + $0x1f0] sm:$0xff] }
 0x10e   :  { %v1126_v22 = vadd.f32 %v1062_v10, %v932_v16  ;;  %v1142_v23 = vadd.f32 %v1078_v11, %v948_v17  ;;  %v969_v16 = vld [vmem:[#allocation9 + $0x78] sm:$0xff] }
 0x10f   :  { %v1095_v24 = vadd.f32 %v1031_v14, %v901_v20  ;;  %v1111_v25 = vadd.f32 %v1047_v15, %v917_v21  ;;  %v985_v17 = vld [vmem:[#allocation9 + $0xf8] sm:$0xff]  ;;  %v1065_v20 = vmul.f32 %v1683_v41, %v1000_v12  ;;  %v1081_v21 = vmul.f32 %v1683_v41, %v1016_v13 }
 0x110   :  { %v1190_v28 = vmax.f32 %v1126_v22, 0.0  ;;  %v1206_v29 = vmax.f32 %v1142_v23, 0.0 }
 0x111   :  { %v1159_v32 = vmax.f32 %v1095_v24, 0.0  ;;  %v1175_v33 = vmax.f32 %v1111_v25, 0.0  ;;  %v1034_v24 = vmul.f32 %v1683_v41, %v969_v16  ;;  %v1050_v25 = vmul.f32 %v1683_v41, %v985_v17 }
 0x112   :  { %1254 = vst [vmem:[#allocation10 + $0x158] sm:$0xff] %v1190_v28 }
 0x113   :  { %1270 = vst [vmem:[#allocation10 + $0x1d8] sm:$0xff] %v1206_v29  ;;  %v640_v36 = vpop.f32.mrf.mxu2  ;;  %v680_v37 = vpop.f32.mrf.mxu3 }
 0x114   :  { %1223 = vst [vmem:[#allocation10 + $0x60] sm:$0xff] %v1159_v32  ;;  %v933_v40 = vadd.f32 %v1688_v43, %v640_v36  ;;  %v949_v42 = vadd.f32 %v1688_v43, %v680_v37  ;;  %v562_v44 = vpop.f32.mrf.mxu0  ;;  %v602_v45 = vpop.f32.mrf.mxu1  ;;  %v1001_v36 = vld [vmem:[#allocation9 + $0x178] sm:$0xff] }
 0x115   :  { %1239 = vst [vmem:[#allocation10 + $0xe0] sm:$0xff] %v1175_v33  ;;  %v902_v46 = vadd.f32 %v1688_v43, %v562_v44  ;;  %v918_v47 = vadd.f32 %v1688_v43, %v602_v45  ;;  %v1017_v37 = vld [vmem:[#allocation9 + $0x1f8] sm:$0xff]  ;;  %v1066_v44 = vmul.f32 %v1683_v41, %v1001_v36 }
 0x116   :  { %v1127_v48 = vadd.f32 %v1063_v34, %v933_v40  ;;  %v1143_v49 = vadd.f32 %v1079_v35, %v949_v42  ;;  %v1082_v45 = vmul.f32 %v1683_v41, %v1017_v37 }
 0x117   :  { %v1096_v50 = vadd.f32 %v1032_v38, %v902_v46  ;;  %v1112_v51 = vadd.f32 %v1048_v39, %v918_v47 }
 0x118   :  { %v1191_v54 = vmax.f32 %v1127_v48, 0.0  ;;  %v1207_v55 = vmax.f32 %v1143_v49, 0.0 }
 0x119   :  { %v1160_v58 = vmax.f32 %v1096_v50, 0.0  ;;  %v1176_v59 = vmax.f32 %v1112_v51, 0.0 }
 0x11a   :  { %1255 = vst [vmem:[#allocation10 + $0x160] sm:$0xff] %v1191_v54 }
 0x11b   :  { %1271 = vst [vmem:[#allocation10 + $0x1e0] sm:$0xff] %v1207_v55  ;;  %v642_v62 = vpop.f32.mrf.mxu2  ;;  %v682_v63 = vpop.f32.mrf.mxu3 }
 0x11c   :  { %1224 = vst [vmem:[#allocation10 + $0x68] sm:$0xff] %v1160_v58  ;;  %v934_v2 = vadd.f32 %v1688_v43, %v642_v62  ;;  %v950_v3 = vadd.f32 %v1688_v43, %v682_v63  ;;  %v565_v4 = vpop.f32.mrf.mxu0  ;;  %v605_v5 = vpop.f32.mrf.mxu1 }
 0x11d   :  { %1240 = vst [vmem:[#allocation10 + $0xe8] sm:$0xff] %v1176_v59  ;;  %v903_v6 = vadd.f32 %v1688_v43, %v565_v4  ;;  %v919_v7 = vadd.f32 %v1688_v43, %v605_v5 }
 0x11e   :  { %v1128_v8 = vadd.f32 %v1064_v60, %v934_v2  ;;  %v1144_v9 = vadd.f32 %v1080_v61, %v950_v3 }
 0x11f   :  { %v1097_v10 = vadd.f32 %v1033_v0, %v903_v6  ;;  %v1113_v11 = vadd.f32 %v1049_v1, %v919_v7 }
 0x120   :  { %v1192_v14 = vmax.f32 %v1128_v8, 0.0  ;;  %v1208_v15 = vmax.f32 %v1144_v9, 0.0 }
 0x121   :  { %v1161_v18 = vmax.f32 %v1097_v10, 0.0  ;;  %v1177_v19 = vmax.f32 %v1113_v11, 0.0 }
 0x122   :  { %1256 = vst [vmem:[#allocation10 + $0x168] sm:$0xff] %v1192_v14 }
 0x123   :  { %1272 = vst [vmem:[#allocation10 + $0x1e8] sm:$0xff] %v1208_v15  ;;  %v645_v22 = vpop.f32.mrf.mxu2  ;;  %v685_v23 = vpop.f32.mrf.mxu3 }
 0x124   :  { %1225 = vst [vmem:[#allocation10 + $0x70] sm:$0xff] %v1161_v18  ;;  %v935_v26 = vadd.f32 %v1688_v43, %v645_v22  ;;  %v951_v27 = vadd.f32 %v1688_v43, %v685_v23  ;;  %v567_v28 = vpop.f32.mrf.mxu0  ;;  %v607_v29 = vpop.f32.mrf.mxu1 }
 0x125   :  { %1241 = vst [vmem:[#allocation10 + $0xf0] sm:$0xff] %v1177_v19  ;;  %v904_v30 = vadd.f32 %v1688_v43, %v567_v28  ;;  %v920_v31 = vadd.f32 %v1688_v43, %v607_v29 }
 0x126   :  { %v1129_v32 = vadd.f32 %v1065_v20, %v935_v26  ;;  %v1145_v33 = vadd.f32 %v1081_v21, %v951_v27 }
 0x127   :  { %v1098_v34 = vadd.f32 %v1034_v24, %v904_v30  ;;  %v1114_v35 = vadd.f32 %v1050_v25, %v920_v31 }
 0x128   :  { %v1193_v38 = vmax.f32 %v1129_v32, 0.0  ;;  %v1209_v39 = vmax.f32 %v1145_v33, 0.0 }
 0x129   :  { %v1162_v40 = vmax.f32 %v1098_v34, 0.0  ;;  %v1178_v42 = vmax.f32 %v1114_v35, 0.0 }
 0x12a   :  { %1257 = vst [vmem:[#allocation10 + $0x170] sm:$0xff] %v1193_v38 }
 0x12b   :  { %1273 = vst [vmem:[#allocation10 + $0x1f0] sm:$0xff] %v1209_v39  ;;  %v647_v46 = vpop.f32.mrf.mxu2  ;;  %v687_v47 = vpop.f32.mrf.mxu3 }
 0x12c   :  { %1226 = vst [vmem:[#allocation10 + $0x78] sm:$0xff] %v1162_v40  ;;  %v936_v48 = vadd.f32 %v1688_v43, %v647_v46  ;;  %v952_v49 = vadd.f32 %v1688_v43, %v687_v47 }
 0x12d   :  { %1242 = vst [vmem:[#allocation10 + $0xf8] sm:$0xff] %v1178_v42 }
 0x12e   :  { %v1130_v50 = vadd.f32 %v1066_v44, %v936_v48  ;;  %v1146_v51 = vadd.f32 %v1082_v45, %v952_v49 }
 0x130   :  { %v1194_v52 = vmax.f32 %v1130_v50, 0.0  ;;  %v1210_v53 = vmax.f32 %v1146_v51, 0.0 }
 0x132   :  { %1258 = vst [vmem:[#allocation10 + $0x178] sm:$0xff] %v1194_v52 }
 0x133   :  { %1274 = vst [vmem:[#allocation10 + $0x1f8] sm:$0xff] %v1210_v53 }
 0x134   :  { %1287 = dma.vmem_to_hbm [thread:$0]  %s1280_s4, 8192, %s1282_s15, [#allocation6], %s1635_s9, %s1635_s9, %s1636_s10  }
 0x135   :  { %1628 = dma.done.wait [#allocation6], 8192  }
 0x136   :  { %1629 = vsyncadd [#allocation6], 4294959104 }
 0x137   :  { %1292 = vsyncpa [#allocation5], 1 }
 0x138   :  { %1293 = vsyncpa [#allocation8], 1 }
 0x139   :  { %1294 = vsyncpa [#allocation6], 1 }

// kernel: tpu_custom_call.1
= control target key start
LH: loop header
LB: loop body
LE: loop exit
PB: predicated region body
PF: predicated region fallthrough
CT: control target
= control target key end

     0   :  { %11 = vsyncpa [#allocation5], 0  ;;  %s1824_s0 = inlined_call_operand.hbm [shape: bf16[512,128], index: 0, kind: input, shape index: {}]   ;;  %s1825_s1 = inlined_call_operand.hbm [shape: bf16[128,128], index: 1, kind: input, shape index: {}]   ;;  %s1826_s2 = inlined_call_operand.vmem [shape: f32[1,128], index: 2, kind: input, shape index: {}]   ;;  %s1827_s3 = inlined_call_operand.hbm [shape: f32[512,128], index: 3, kind: input, shape index: {}]   ;;  %s1828_s4 = inlined_call_operand.<no memory space> [shape: f32[1], index: 4, kind: input, shape index: {}]   ;;  %s1829_s5 = inlined_call_operand.hbm [shape: f32[512,128], index: 5, kind: output, shape index: {}]  }
   0x1   :  { %12 = vsyncpa [#allocation8], 0 }
   0x2   :  { %13 = vsyncpa [#allocation6], 0  ;;  %s31_s20 = sshll.u32 %s1825_s1, 4  ;;  %s1630_s21 = smov [#allocation7]   ;;  %s32_s20 = int_to_ptr.hbm [resolvable:$true] %s31_s20 }
   0x3   :  { %s33_s22 = sshll.u32 %s1630_s21, 4  ;;  %s18_s25 = sshll.u32 %s1824_s0, 4  ;;  %s34_s22 = int_to_ptr.vmem [resolvable:$true] %s33_s22  ;;  %s19_s25 = int_to_ptr.hbm [resolvable:$true] %s18_s25 }
   0x4   :  { %s1631_s26 = smov 64   ;;  %s1632_s27 = smov 4  }
   0x5   :  { %39 = dma.hbm_to_vmem [thread:$0]  %s32_s20, 1024, %s34_s22, [#allocation8], %s1631_s26, %s1631_s26, %s1632_s27  }
   0x6   :  { %s1633_s28 = smov [#allocation4]   ;;  %s46_s7 = sshll.u32 %s1827_s3, 4  ;;  %s47_s7 = int_to_ptr.hbm [resolvable:$true] %s46_s7 }
   0x7   :  { %s20_s29 = sshll.u32 %s1633_s28, 4  ;;  %s1634_s1 = smov [#allocation9]   ;;  %s21_s29 = int_to_ptr.vmem [resolvable:$true] %s20_s29 }
   0x8   :  { %26 = dma.hbm_to_vmem [thread:$0]  %s19_s25, 4096, %s21_s29, [#allocation5], %s1631_s26, %s1631_s26, %s1632_s27  }
   0x9   :  { %s48_s8 = sshll.u32 %s1634_s1, 4  ;;  %s1635_s9 = smov 128   ;;  %s49_s8 = int_to_ptr.vmem [resolvable:$true] %s48_s8 }
   0xa   :  { %s1636_s10 = smov 8  }
   0xb   :  { %54 = dma.hbm_to_vmem [thread:$0]  %s47_s7, 8192, %s49_s8, [#allocation8], %s1635_s9, %s1635_s9, %s1636_s10  }
   0xc   :  { %1624 = dma.done.wait [#allocation5], 4096  }
   0xd   :  { %1625 = vsyncadd [#allocation5], 4294963200 }
   0xe   :  { %1626 = dma.done.wait [#allocation8], 9216  }
   0xf   :  { %1627 = vsyncadd [#allocation8], 4294958080  ;;  %v1494_v0 = vld [vmem:[#allocation7 + $0x38] sm:$0xff]  ;;  %v1493_v1 = vld [vmem:[#allocation7 + $0x30] sm:$0xff]  ;;  %v1683_v41 = vstv %s1828_s4  ;;  %s1281_s15 = sshll.u32 %s1829_s5, 4  ;;  %s1282_s15 = int_to_ptr.hbm [resolvable:$true] %s1281_s15 }
  0x10   :  { %521 = vmatpush.bf16.msra.mxu0 %v1494_v0  ;;  %1495 = vmatpush.bf16.msra.mxu1 %v1494_v0  ;;  %v1492_v2 = vld [vmem:[#allocation7 + $0x28] sm:$0xff]  ;;  %v1491_v3 = vld [vmem:[#allocation7 + $0x20] sm:$0xff]  ;;  %v1490_v4 = vld [vmem:[#allocation7 + $0x18] sm:$0xff] }
  0x11   :  { %1496 = vmatpush.bf16.msra.mxu2 %v1494_v0  ;;  %1497 = vmatpush.bf16.msra.mxu3 %v1494_v0  ;;  %v1489_v5 = vld [vmem:[#allocation7 + $0x10] sm:$0xff]  ;;  %v1488_v6 = vld [vmem:[#allocation7 + $0x8] sm:$0xff]  ;;  %v1487_v7 = vld [vmem:[#allocation7] sm:$0xff] }
  0x12   :  { %v1455_v8 = vld [vmem:[#allocation4] sm:$0xff]  ;;  %v1456_v12 = vld [vmem:[#allocation4 + $0x8] sm:$0xff]  ;;  %v1457_v16 = vld [vmem:[#allocation4 + $0x10] sm:$0xff] }
  0x13   :  { %v1463_v9 = vld [vmem:[#allocation4 + $0x40] sm:$0xff]  ;;  %v1464_v13 = vld [vmem:[#allocation4 + $0x48] sm:$0xff]  ;;  %v1465_v17 = vld [vmem:[#allocation4 + $0x50] sm:$0xff] }
  0x14   :  { %522 = vmatpush.bf16.msra.mxu0 %v1493_v1  ;;  %1498 = vmatpush.bf16.msra.mxu1 %v1493_v1  ;;  %v1471_v10 = vld [vmem:[#allocation4 + $0x80] sm:$0xff]  ;;  %v1472_v14 = vld [vmem:[#allocation4 + $0x88] sm:$0xff]  ;;  %v1473_v18 = vld [vmem:[#allocation4 + $0x90] sm:$0xff] }
  0x15   :  { %1499 = vmatpush.bf16.msra.mxu2 %v1493_v1  ;;  %1500 = vmatpush.bf16.msra.mxu3 %v1493_v1  ;;  %v1479_v11 = vld [vmem:[#allocation4 + $0xc0] sm:$0xff]  ;;  %v1480_v15 = vld [vmem:[#allocation4 + $0xc8] sm:$0xff]  ;;  %v1481_v19 = vld [vmem:[#allocation4 + $0xd0] sm:$0xff] }
  0x16   :  { %v1458_v20 = vld [vmem:[#allocation4 + $0x18] sm:$0xff]  ;;  %v1459_v24 = vld [vmem:[#allocation4 + $0x20] sm:$0xff]  ;;  %v1460_v28 = vld [vmem:[#allocation4 + $0x28] sm:$0xff] }
  0x17   :  { %v1466_v21 = vld [vmem:[#allocation4 + $0x58] sm:$0xff]  ;;  %v1467_v25 = vld [vmem:[#allocation4 + $0x60] sm:$0xff]  ;;  %v1468_v29 = vld [vmem:[#allocation4 + $0x68] sm:$0xff] }
  0x18   :  { %523 = vmatpush.bf16.msra.mxu0 %v1492_v2  ;;  %1501 = vmatpush.bf16.msra.mxu1 %v1492_v2  ;;  %v1474_v22 = vld [vmem:[#allocation4 + $0x98] sm:$0xff]  ;;  %v1475_v26 = vld [vmem:[#allocation4 + $0xa0] sm:$0xff]  ;;  %v1476_v30 = vld [vmem:[#allocation4 + $0xa8] sm:$0xff] }
  0x19   :  { %1502 = vmatpush.bf16.msra.mxu2 %v1492_v2  ;;  %1503 = vmatpush.bf16.msra.mxu3 %v1492_v2  ;;  %v1482_v23 = vld [vmem:[#allocation4 + $0xd8] sm:$0xff]  ;;  %v1483_v27 = vld [vmem:[#allocation4 + $0xe0] sm:$0xff]  ;;  %v1484_v31 = vld [vmem:[#allocation4 + $0xe8] sm:$0xff] }
  0x1a   :  { %v1461_v32 = vld [vmem:[#allocation4 + $0x30] sm:$0xff]  ;;  %v1462_v36 = vld [vmem:[#allocation4 + $0x38] sm:$0xff]  ;;  %v954_v40 = vld [vmem:[#allocation9] sm:$0xff] }
  0x1b   :  { %v1469_v33 = vld [vmem:[#allocation4 + $0x70] sm:$0xff]  ;;  %v1470_v37 = vld [vmem:[#allocation4 + $0x78] sm:$0xff]  ;;  %v970_v42 = vld [vmem:[#allocation9 + $0x80] sm:$0xff]  ;;  %v1019_v44 = vmul.f32 %v1683_v41, %v954_v40 }
  0x1c   :  { %524 = vmatpush.bf16.msra.mxu0 %v1491_v3  ;;  %1504 = vmatpush.bf16.msra.mxu1 %v1491_v3  ;;  %v1477_v34 = vld [vmem:[#allocation4 + $0xb0] sm:$0xff]  ;;  %v1478_v38 = vld [vmem:[#allocation4 + $0xb8] sm:$0xff]  ;;  %v1688_v43 = vld [vmem:[%s1826_s2] ss:$0 sm:$0xff]  ;;  %v1035_v45 = vmul.f32 %v1683_v41, %v970_v42  ;;  %s1637_s2 = smov [#allocation10]  }
  0x1d   :  { %1505 = vmatpush.bf16.msra.mxu2 %v1491_v3  ;;  %1506 = vmatpush.bf16.msra.mxu3 %v1491_v3  ;;  %v1485_v35 = vld [vmem:[#allocation4 + $0xf0] sm:$0xff]  ;;  %v1486_v39 = vld [vmem:[#allocation4 + $0xf8] sm:$0xff]  ;;  %v986_v52 = vld [vmem:[#allocation9 + $0x100] sm:$0xff]  ;;  %s1279_s4 = sshll.u32 %s1637_s2, 4  ;;  %s1280_s4 = int_to_ptr.vmem [resolvable:$true] %s1279_s4 }
  0x1e   :  { %v1002_v53 = vld [vmem:[#allocation9 + $0x180] sm:$0xff]  ;;  %v955_v54 = vld [vmem:[#allocation9 + $0x8] sm:$0xff]  ;;  %v1051_v58 = vmul.f32 %v1683_v41, %v986_v52 }
  0x1f   :  { %v971_v55 = vld [vmem:[#allocation9 + $0x88] sm:$0xff]  ;;  %v1067_v59 = vmul.f32 %v1683_v41, %v1002_v53  ;;  %v1020_v62 = vmul.f32 %v1683_v41, %v955_v54 }
  0x20   :  { %525 = vmatpush.bf16.msra.mxu0 %v1490_v4  ;;  %1507 = vmatpush.bf16.msra.mxu1 %v1490_v4  ;;  %v1036_v63 = vmul.f32 %v1683_v41, %v971_v55 }
  0x21   :  { %1508 = vmatpush.bf16.msra.mxu2 %v1490_v4  ;;  %1509 = vmatpush.bf16.msra.mxu3 %v1490_v4 }
  0x24   :  { %526 = vmatpush.bf16.msra.mxu0 %v1489_v5  ;;  %1510 = vmatpush.bf16.msra.mxu1 %v1489_v5 }
  0x25   :  { %1511 = vmatpush.bf16.msra.mxu2 %v1489_v5  ;;  %1512 = vmatpush.bf16.msra.mxu3 %v1489_v5 }
  0x28   :  { %527 = vmatpush.bf16.msra.mxu0 %v1488_v6  ;;  %1513 = vmatpush.bf16.msra.mxu1 %v1488_v6 }
  0x29   :  { %1514 = vmatpush.bf16.msra.mxu2 %v1488_v6  ;;  %1515 = vmatpush.bf16.msra.mxu3 %v1488_v6 }
  0x2c   :  { %528 = vmatpush.bf16.msra.mxu0 %v1487_v7  ;;  %1516 = vmatpush.bf16.msra.mxu1 %v1487_v7 }
  0x2d   :  { %1517 = vmatpush.bf16.msra.mxu2 %v1487_v7  ;;  %1518 = vmatpush.bf16.msra.mxu3 %v1487_v7 }
  0x2f   :  { %529 = vmatmul.bf16.vlgmr.msra.gmra.mxu0 %v1455_v8  ;;  %569 = vmatmul.bf16.vlgmr.msra.gmra.mxu1 %v1463_v9 }
  0x30   :  { %609 = vmatmul.bf16.vlgmr.msra.gmra.mxu2 %v1471_v10  ;;  %649 = vmatmul.bf16.vlgmr.msra.gmra.mxu3 %v1479_v11  ;;  %v987_v10 = vld [vmem:[#allocation9 + $0x108] sm:$0xff] }
  0x31   :  { %v1003_v11 = vld [vmem:[#allocation9 + $0x188] sm:$0xff] }
  0x3f   :  { %534 = vmatmul.bf16.gmra.mxu0 %v1456_v12  ;;  %574 = vmatmul.bf16.gmra.mxu1 %v1464_v13 }
  0x40   :  { %614 = vmatmul.bf16.gmra.mxu2 %v1472_v14  ;;  %654 = vmatmul.bf16.gmra.mxu3 %v1480_v15  ;;  %v956_v14 = vld [vmem:[#allocation9 + $0x10] sm:$0xff] }
  0x41   :  { %v972_v15 = vld [vmem:[#allocation9 + $0x90] sm:$0xff] }
  0x4f   :  { %539 = vmatmul.bf16.gmra.mxu0 %v1457_v16  ;;  %579 = vmatmul.bf16.gmra.mxu1 %v1465_v17 }
  0x50   :  { %619 = vmatmul.bf16.gmra.mxu2 %v1473_v18  ;;  %659 = vmatmul.bf16.gmra.mxu3 %v1481_v19  ;;  %v1052_v18 = vmul.f32 %v1683_v41, %v987_v10  ;;  %v1068_v19 = vmul.f32 %v1683_v41, %v1003_v11 }
  0x5f   :  { %544 = vmatmul.bf16.gmra.mxu0 %v1458_v20  ;;  %584 = vmatmul.bf16.gmra.mxu1 %v1466_v21 }
  0x60   :  { %624 = vmatmul.bf16.gmra.mxu2 %v1474_v22  ;;  %664 = vmatmul.bf16.gmra.mxu3 %v1482_v23  ;;  %v1021_v22 = vmul.f32 %v1683_v41, %v956_v14  ;;  %v1037_v23 = vmul.f32 %v1683_v41, %v972_v15 }
  0x6f   :  { %549 = vmatmul.bf16.gmra.mxu0 %v1459_v24  ;;  %589 = vmatmul.bf16.gmra.mxu1 %v1467_v25 }
  0x70   :  { %629 = vmatmul.bf16.gmra.mxu2 %v1475_v26  ;;  %669 = vmatmul.bf16.gmra.mxu3 %v1483_v27 }
  0x7f   :  { %554 = vmatmul.bf16.gmra.mxu0 %v1460_v28  ;;  %594 = vmatmul.bf16.gmra.mxu1 %v1468_v29 }
  0x80   :  { %634 = vmatmul.bf16.gmra.mxu2 %v1476_v30  ;;  %674 = vmatmul.bf16.gmra.mxu3 %v1484_v31 }
  0x8f   :  { %559 = vmatmul.bf16.gmra.mxu0 %v1461_v32  ;;  %599 = vmatmul.bf16.gmra.mxu1 %v1469_v33 }
  0x90   :  { %639 = vmatmul.bf16.gmra.mxu2 %v1477_v34  ;;  %679 = vmatmul.bf16.gmra.mxu3 %v1485_v35  ;;  %v988_v34 = vld [vmem:[#allocation9 + $0x110] sm:$0xff] }
  0x91   :  { %v1004_v35 = vld [vmem:[#allocation9 + $0x190] sm:$0xff] }
  0x9f   :  { %564 = vmatmul.bf16.gmra.mxu0 %v1462_v36  ;;  %604 = vmatmul.bf16.gmra.mxu1 %v1470_v37 }
  0xa0   :  { %644 = vmatmul.bf16.gmra.mxu2 %v1478_v38  ;;  %684 = vmatmul.bf16.gmra.mxu3 %v1486_v39  ;;  %v957_v38 = vld [vmem:[#allocation9 + $0x18] sm:$0xff] }
  0xa1   :  { %v973_v39 = vld [vmem:[#allocation9 + $0x98] sm:$0xff] }
  0xac   :  { %v530_v46 = vpop.f32.mrf.mxu0  ;;  %v570_v47 = vpop.f32.mrf.mxu1 }
  0xad   :  { %v889_v48 = vadd.f32 %v1688_v43, %v530_v46  ;;  %v905_v49 = vadd.f32 %v1688_v43, %v570_v47 }
  0xaf   :  { %v1083_v50 = vadd.f32 %v1019_v44, %v889_v48  ;;  %v1099_v51 = vadd.f32 %v1035_v45, %v905_v49  ;;  %v1053_v44 = vmul.f32 %v1683_v41, %v988_v34  ;;  %v1069_v45 = vmul.f32 %v1683_v41, %v1004_v35 }
  0xb0   :  { %v1022_v48 = vmul.f32 %v1683_v41, %v957_v38  ;;  %v1038_v49 = vmul.f32 %v1683_v41, %v973_v39 }
  0xb1   :  { %v1147_v56 = vmax.f32 %v1083_v50, 0.0  ;;  %v1163_v57 = vmax.f32 %v1099_v51, 0.0 }
  0xb3   :  { %1211 = vst [vmem:[#allocation10] sm:$0xff] %v1147_v56  ;;  %v610_v60 = vpop.f32.mrf.mxu2  ;;  %v650_v61 = vpop.f32.mrf.mxu3 }
  0xb4   :  { %1227 = vst [vmem:[#allocation10 + $0x80] sm:$0xff] %v1163_v57  ;;  %v921_v0 = vadd.f32 %v1688_v43, %v610_v60  ;;  %v937_v1 = vadd.f32 %v1688_v43, %v650_v61  ;;  %v532_v2 = vpop.f32.mrf.mxu0  ;;  %v572_v3 = vpop.f32.mrf.mxu1  ;;  %v989_v60 = vld [vmem:[#allocation9 + $0x118] sm:$0xff] }
  0xb5   :  { %v890_v4 = vadd.f32 %v1688_v43, %v532_v2  ;;  %v906_v5 = vadd.f32 %v1688_v43, %v572_v3  ;;  %v1005_v61 = vld [vmem:[#allocation9 + $0x198] sm:$0xff] }
  0xb6   :  { %v1115_v6 = vadd.f32 %v1051_v58, %v921_v0  ;;  %v1131_v7 = vadd.f32 %v1067_v59, %v937_v1  ;;  %v958_v0 = vld [vmem:[#allocation9 + $0x20] sm:$0xff] }
  0xb7   :  { %v1084_v8 = vadd.f32 %v1020_v62, %v890_v4  ;;  %v1100_v9 = vadd.f32 %v1036_v63, %v906_v5  ;;  %v974_v1 = vld [vmem:[#allocation9 + $0xa0] sm:$0xff]  ;;  %v1054_v4 = vmul.f32 %v1683_v41, %v989_v60  ;;  %v1070_v5 = vmul.f32 %v1683_v41, %v1005_v61 }
  0xb8   :  { %v1179_v12 = vmax.f32 %v1115_v6, 0.0  ;;  %v1195_v13 = vmax.f32 %v1131_v7, 0.0 }
  0xb9   :  { %v1148_v16 = vmax.f32 %v1084_v8, 0.0  ;;  %v1164_v17 = vmax.f32 %v1100_v9, 0.0  ;;  %v1023_v8 = vmul.f32 %v1683_v41, %v958_v0  ;;  %v1039_v9 = vmul.f32 %v1683_v41, %v974_v1 }
  0xba   :  { %1243 = vst [vmem:[#allocation10 + $0x100] sm:$0xff] %v1179_v12 }
  0xbb   :  { %1259 = vst [vmem:[#allocation10 + $0x180] sm:$0xff] %v1195_v13  ;;  %v612_v20 = vpop.f32.mrf.mxu2  ;;  %v652_v21 = vpop.f32.mrf.mxu3 }
  0xbc   :  { %1212 = vst [vmem:[#allocation10 + $0x8] sm:$0xff] %v1148_v16  ;;  %v922_v24 = vadd.f32 %v1688_v43, %v612_v20  ;;  %v938_v25 = vadd.f32 %v1688_v43, %v652_v21  ;;  %v535_v26 = vpop.f32.mrf.mxu0  ;;  %v575_v27 = vpop.f32.mrf.mxu1  ;;  %v990_v20 = vld [vmem:[#allocation9 + $0x120] sm:$0xff] }
  0xbd   :  { %1228 = vst [vmem:[#allocation10 + $0x88] sm:$0xff] %v1164_v17  ;;  %v891_v28 = vadd.f32 %v1688_v43, %v535_v26  ;;  %v907_v29 = vadd.f32 %v1688_v43, %v575_v27  ;;  %v1006_v21 = vld [vmem:[#allocation9 + $0x1a0] sm:$0xff] }
  0xbe   :  { %v1116_v30 = vadd.f32 %v1052_v18, %v922_v24  ;;  %v1132_v31 = vadd.f32 %v1068_v19, %v938_v25  ;;  %v959_v24 = vld [vmem:[#allocation9 + $0x28] sm:$0xff] }
  0xbf   :  { %v1085_v32 = vadd.f32 %v1021_v22, %v891_v28  ;;  %v1101_v33 = vadd.f32 %v1037_v23, %v907_v29  ;;  %v975_v25 = vld [vmem:[#allocation9 + $0xa8] sm:$0xff]  ;;  %v1055_v28 = vmul.f32 %v1683_v41, %v990_v20  ;;  %v1071_v29 = vmul.f32 %v1683_v41, %v1006_v21 }
  0xc0   :  { %v1180_v36 = vmax.f32 %v1116_v30, 0.0  ;;  %v1196_v37 = vmax.f32 %v1132_v31, 0.0 }
  0xc1   :  { %v1149_v40 = vmax.f32 %v1085_v32, 0.0  ;;  %v1165_v42 = vmax.f32 %v1101_v33, 0.0  ;;  %v1024_v32 = vmul.f32 %v1683_v41, %v959_v24  ;;  %v1040_v33 = vmul.f32 %v1683_v41, %v975_v25 }
  0xc2   :  { %1244 = vst [vmem:[#allocation10 + $0x108] sm:$0xff] %v1180_v36 }
  0xc3   :  { %1260 = vst [vmem:[#allocation10 + $0x188] sm:$0xff] %v1196_v37  ;;  %v615_v46 = vpop.f32.mrf.mxu2  ;;  %v655_v47 = vpop.f32.mrf.mxu3 }
  0xc4   :  { %1213 = vst [vmem:[#allocation10 + $0x10] sm:$0xff] %v1149_v40  ;;  %v923_v50 = vadd.f32 %v1688_v43, %v615_v46  ;;  %v939_v51 = vadd.f32 %v1688_v43, %v655_v47  ;;  %v537_v52 = vpop.f32.mrf.mxu0  ;;  %v577_v53 = vpop.f32.mrf.mxu1  ;;  %v991_v46 = vld [vmem:[#allocation9 + $0x128] sm:$0xff] }
  0xc5   :  { %1229 = vst [vmem:[#allocation10 + $0x90] sm:$0xff] %v1165_v42  ;;  %v892_v54 = vadd.f32 %v1688_v43, %v537_v52  ;;  %v908_v55 = vadd.f32 %v1688_v43, %v577_v53  ;;  %v1007_v47 = vld [vmem:[#allocation9 + $0x1a8] sm:$0xff] }
  0xc6   :  { %v1117_v56 = vadd.f32 %v1053_v44, %v923_v50  ;;  %v1133_v57 = vadd.f32 %v1069_v45, %v939_v51  ;;  %v960_v50 = vld [vmem:[#allocation9 + $0x30] sm:$0xff] }
  0xc7   :  { %v1086_v58 = vadd.f32 %v1022_v48, %v892_v54  ;;  %v1102_v59 = vadd.f32 %v1038_v49, %v908_v55  ;;  %v976_v51 = vld [vmem:[#allocation9 + $0xb0] sm:$0xff]  ;;  %v1056_v54 = vmul.f32 %v1683_v41, %v991_v46  ;;  %v1072_v55 = vmul.f32 %v1683_v41, %v1007_v47 }
  0xc8   :  { %v1181_v62 = vmax.f32 %v1117_v56, 0.0  ;;  %v1197_v63 = vmax.f32 %v1133_v57, 0.0 }
  0xc9   :  { %v1150_v2 = vmax.f32 %v1086_v58, 0.0  ;;  %v1166_v3 = vmax.f32 %v1102_v59, 0.0  ;;  %v1025_v58 = vmul.f32 %v1683_v41, %v960_v50  ;;  %v1041_v59 = vmul.f32 %v1683_v41, %v976_v51 }
  0xca   :  { %1245 = vst [vmem:[#allocation10 + $0x110] sm:$0xff] %v1181_v62 }
  0xcb   :  { %1261 = vst [vmem:[#allocation10 + $0x190] sm:$0xff] %v1197_v63  ;;  %v617_v6 = vpop.f32.mrf.mxu2  ;;  %v657_v7 = vpop.f32.mrf.mxu3 }
  0xcc   :  { %1214 = vst [vmem:[#allocation10 + $0x18] sm:$0xff] %v1150_v2  ;;  %v924_v10 = vadd.f32 %v1688_v43, %v617_v6  ;;  %v940_v11 = vadd.f32 %v1688_v43, %v657_v7  ;;  %v540_v12 = vpop.f32.mrf.mxu0  ;;  %v580_v13 = vpop.f32.mrf.mxu1  ;;  %v992_v6 = vld [vmem:[#allocation9 + $0x130] sm:$0xff] }
  0xcd   :  { %1230 = vst [vmem:[#allocation10 + $0x98] sm:$0xff] %v1166_v3  ;;  %v893_v14 = vadd.f32 %v1688_v43, %v540_v12  ;;  %v909_v15 = vadd.f32 %v1688_v43, %v580_v13  ;;  %v1008_v7 = vld [vmem:[#allocation9 + $0x1b0] sm:$0xff] }
  0xce   :  { %v1118_v16 = vadd.f32 %v1054_v4, %v924_v10  ;;  %v1134_v17 = vadd.f32 %v1070_v5, %v940_v11  ;;  %v961_v10 = vld [vmem:[#allocation9 + $0x38] sm:$0xff] }
  0xcf   :  { %v1087_v18 = vadd.f32 %v1023_v8, %v893_v14  ;;  %v1103_v19 = vadd.f32 %v1039_v9, %v909_v15  ;;  %v977_v11 = vld [vmem:[#allocation9 + $0xb8] sm:$0xff]  ;;  %v1057_v14 = vmul.f32 %v1683_v41, %v992_v6  ;;  %v1073_v15 = vmul.f32 %v1683_v41, %v1008_v7 }
  0xd0   :  { %v1182_v22 = vmax.f32 %v1118_v16, 0.0  ;;  %v1198_v23 = vmax.f32 %v1134_v17, 0.0 }
  0xd1   :  { %v1151_v26 = vmax.f32 %v1087_v18, 0.0  ;;  %v1167_v27 = vmax.f32 %v1103_v19, 0.0  ;;  %v1026_v18 = vmul.f32 %v1683_v41, %v961_v10  ;;  %v1042_v19 = vmul.f32 %v1683_v41, %v977_v11 }
  0xd2   :  { %1246 = vst [vmem:[#allocation10 + $0x118] sm:$0xff] %v1182_v22 }
  0xd3   :  { %1262 = vst [vmem:[#allocation10 + $0x198] sm:$0xff] %v1198_v23  ;;  %v620_v30 = vpop.f32.mrf.mxu2  ;;  %v660_v31 = vpop.f32.mrf.mxu3 }
  0xd4   :  { %1215 = vst [vmem:[#allocation10 + $0x20] sm:$0xff] %v1151_v26  ;;  %v925_v34 = vadd.f32 %v1688_v43, %v620_v30  ;;  %v941_v35 = vadd.f32 %v1688_v43, %v660_v31  ;;  %v542_v36 = vpop.f32.mrf.mxu0  ;;  %v582_v37 = vpop.f32.mrf.mxu1  ;;  %v993_v30 = vld [vmem:[#allocation9 + $0x138] sm:$0xff] }
  0xd5   :  { %1231 = vst [vmem:[#allocation10 + $0xa0] sm:$0xff] %v1167_v27  ;;  %v894_v38 = vadd.f32 %v1688_v43, %v542_v36  ;;  %v910_v39 = vadd.f32 %v1688_v43, %v582_v37  ;;  %v1009_v31 = vld [vmem:[#allocation9 + $0x1b8] sm:$0xff] }
  0xd6   :  { %v1119_v40 = vadd.f32 %v1055_v28, %v925_v34  ;;  %v1135_v42 = vadd.f32 %v1071_v29, %v941_v35  ;;  %v962_v34 = vld [vmem:[#allocation9 + $0x40] sm:$0xff] }
  0xd7   :  { %v1088_v44 = vadd.f32 %v1024_v32, %v894_v38  ;;  %v1104_v45 = vadd.f32 %v1040_v33, %v910_v39  ;;  %v978_v35 = vld [vmem:[#allocation9 + $0xc0] sm:$0xff]  ;;  %v1058_v38 = vmul.f32 %v1683_v41, %v993_v30  ;;  %v1074_v39 = vmul.f32 %v1683_v41, %v1009_v31 }
  0xd8   :  { %v1183_v48 = vmax.f32 %v1119_v40, 0.0  ;;  %v1199_v49 = vmax.f32 %v1135_v42, 0.0 }
  0xd9   :  { %v1152_v52 = vmax.f32 %v1088_v44, 0.0  ;;  %v1168_v53 = vmax.f32 %v1104_v45, 0.0  ;;  %v1027_v44 = vmul.f32 %v1683_v41, %v962_v34  ;;  %v1043_v45 = vmul.f32 %v1683_v41, %v978_v35 }
  0xda   :  { %1247 = vst [vmem:[#allocation10 + $0x120] sm:$0xff] %v1183_v48 }
  0xdb   :  { %1263 = vst [vmem:[#allocation10 + $0x1a0] sm:$0xff] %v1199_v49  ;;  %v622_v56 = vpop.f32.mrf.mxu2  ;;  %v662_v57 = vpop.f32.mrf.mxu3 }
  0xdc   :  { %1216 = vst [vmem:[#allocation10 + $0x28] sm:$0xff] %v1152_v52  ;;  %v926_v60 = vadd.f32 %v1688_v43, %v622_v56  ;;  %v942_v61 = vadd.f32 %v1688_v43, %v662_v57  ;;  %v545_v62 = vpop.f32.mrf.mxu0  ;;  %v585_v63 = vpop.f32.mrf.mxu1  ;;  %v994_v56 = vld [vmem:[#allocation9 + $0x140] sm:$0xff] }
  0xdd   :  { %1232 = vst [vmem:[#allocation10 + $0xa8] sm:$0xff] %v1168_v53  ;;  %v895_v0 = vadd.f32 %v1688_v43, %v545_v62  ;;  %v911_v1 = vadd.f32 %v1688_v43, %v585_v63  ;;  %v1010_v57 = vld [vmem:[#allocation9 + $0x1c0] sm:$0xff] }
  0xde   :  { %v1120_v2 = vadd.f32 %v1056_v54, %v926_v60  ;;  %v1136_v3 = vadd.f32 %v1072_v55, %v942_v61  ;;  %v963_v60 = vld [vmem:[#allocation9 + $0x48] sm:$0xff] }
  0xdf   :  { %v1089_v4 = vadd.f32 %v1025_v58, %v895_v0  ;;  %v1105_v5 = vadd.f32 %v1041_v59, %v911_v1  ;;  %v979_v61 = vld [vmem:[#allocation9 + $0xc8] sm:$0xff]  ;;  %v1059_v0 = vmul.f32 %v1683_v41, %v994_v56  ;;  %v1075_v1 = vmul.f32 %v1683_v41, %v1010_v57 }
  0xe0   :  { %v1184_v8 = vmax.f32 %v1120_v2, 0.0  ;;  %v1200_v9 = vmax.f32 %v1136_v3, 0.0 }
  0xe1   :  { %v1153_v12 = vmax.f32 %v1089_v4, 0.0  ;;  %v1169_v13 = vmax.f32 %v1105_v5, 0.0  ;;  %v1028_v4 = vmul.f32 %v1683_v41, %v963_v60  ;;  %v1044_v5 = vmul.f32 %v1683_v41, %v979_v61 }
  0xe2   :  { %1248 = vst [vmem:[#allocation10 + $0x128] sm:$0xff] %v1184_v8 }
  0xe3   :  { %1264 = vst [vmem:[#allocation10 + $0x1a8] sm:$0xff] %v1200_v9  ;;  %v625_v16 = vpop.f32.mrf.mxu2  ;;  %v665_v17 = vpop.f32.mrf.mxu3 }
  0xe4   :  { %1217 = vst [vmem:[#allocation10 + $0x30] sm:$0xff] %v1153_v12  ;;  %v927_v20 = vadd.f32 %v1688_v43, %v625_v16  ;;  %v943_v21 = vadd.f32 %v1688_v43, %v665_v17  ;;  %v547_v22 = vpop.f32.mrf.mxu0  ;;  %v587_v23 = vpop.f32.mrf.mxu1  ;;  %v995_v16 = vld [vmem:[#allocation9 + $0x148] sm:$0xff] }
  0xe5   :  { %1233 = vst [vmem:[#allocation10 + $0xb0] sm:$0xff] %v1169_v13  ;;  %v896_v24 = vadd.f32 %v1688_v43, %v547_v22  ;;  %v912_v25 = vadd.f32 %v1688_v43, %v587_v23  ;;  %v1011_v17 = vld [vmem:[#allocation9 + $0x1c8] sm:$0xff] }
  0xe6   :  { %v1121_v26 = vadd.f32 %v1057_v14, %v927_v20  ;;  %v1137_v27 = vadd.f32 %v1073_v15, %v943_v21  ;;  %v964_v20 = vld [vmem:[#allocation9 + $0x50] sm:$0xff] }
  0xe7   :  { %v1090_v28 = vadd.f32 %v1026_v18, %v896_v24  ;;  %v1106_v29 = vadd.f32 %v1042_v19, %v912_v25  ;;  %v980_v21 = vld [vmem:[#allocation9 + $0xd0] sm:$0xff]  ;;  %v1060_v24 = vmul.f32 %v1683_v41, %v995_v16  ;;  %v1076_v25 = vmul.f32 %v1683_v41, %v1011_v17 }
  0xe8   :  { %v1185_v32 = vmax.f32 %v1121_v26, 0.0  ;;  %v1201_v33 = vmax.f32 %v1137_v27, 0.0 }
  0xe9   :  { %v1154_v36 = vmax.f32 %v1090_v28, 0.0  ;;  %v1170_v37 = vmax.f32 %v1106_v29, 0.0  ;;  %v1029_v28 = vmul.f32 %v1683_v41, %v964_v20  ;;  %v1045_v29 = vmul.f32 %v1683_v41, %v980_v21 }
  0xea   :  { %1249 = vst [vmem:[#allocation10 + $0x130] sm:$0xff] %v1185_v32 }
  0xeb   :  { %1265 = vst [vmem:[#allocation10 + $0x1b0] sm:$0xff] %v1201_v33  ;;  %v627_v40 = vpop.f32.mrf.mxu2  ;;  %v667_v42 = vpop.f32.mrf.mxu3 }
  0xec   :  { %1218 = vst [vmem:[#allocation10 + $0x38] sm:$0xff] %v1154_v36  ;;  %v928_v46 = vadd.f32 %v1688_v43, %v627_v40  ;;  %v944_v47 = vadd.f32 %v1688_v43, %v667_v42  ;;  %v550_v48 = vpop.f32.mrf.mxu0  ;;  %v590_v49 = vpop.f32.mrf.mxu1  ;;  %v996_v40 = vld [vmem:[#allocation9 + $0x150] sm:$0xff] }
  0xed   :  { %1234 = vst [vmem:[#allocation10 + $0xb8] sm:$0xff] %v1170_v37  ;;  %v897_v50 = vadd.f32 %v1688_v43, %v550_v48  ;;  %v913_v51 = vadd.f32 %v1688_v43, %v590_v49  ;;  %v1012_v42 = vld [vmem:[#allocation9 + $0x1d0] sm:$0xff] }
  0xee   :  { %v1122_v52 = vadd.f32 %v1058_v38, %v928_v46  ;;  %v1138_v53 = vadd.f32 %v1074_v39, %v944_v47  ;;  %v965_v46 = vld [vmem:[#allocation9 + $0x58] sm:$0xff] }
  0xef   :  { %v1091_v54 = vadd.f32 %v1027_v44, %v897_v50  ;;  %v1107_v55 = vadd.f32 %v1043_v45, %v913_v51  ;;  %v981_v47 = vld [vmem:[#allocation9 + $0xd8] sm:$0xff]  ;;  %v1061_v50 = vmul.f32 %v1683_v41, %v996_v40  ;;  %v1077_v51 = vmul.f32 %v1683_v41, %v1012_v42 }
  0xf0   :  { %v1186_v58 = vmax.f32 %v1122_v52, 0.0  ;;  %v1202_v59 = vmax.f32 %v1138_v53, 0.0 }
  0xf1   :  { %v1155_v62 = vmax.f32 %v1091_v54, 0.0  ;;  %v1171_v63 = vmax.f32 %v1107_v55, 0.0  ;;  %v1030_v54 = vmul.f32 %v1683_v41, %v965_v46  ;;  %v1046_v55 = vmul.f32 %v1683_v41, %v981_v47 }
  0xf2   :  { %1250 = vst [vmem:[#allocation10 + $0x138] sm:$0xff] %v1186_v58 }
  0xf3   :  { %1266 = vst [vmem:[#allocation10 + $0x1b8] sm:$0xff] %v1202_v59  ;;  %v630_v2 = vpop.f32.mrf.mxu2  ;;  %v670_v3 = vpop.f32.mrf.mxu3 }
  0xf4   :  { %1219 = vst [vmem:[#allocation10 + $0x40] sm:$0xff] %v1155_v62  ;;  %v929_v6 = vadd.f32 %v1688_v43, %v630_v2  ;;  %v945_v7 = vadd.f32 %v1688_v43, %v670_v3  ;;  %v552_v8 = vpop.f32.mrf.mxu0  ;;  %v592_v9 = vpop.f32.mrf.mxu1  ;;  %v997_v2 = vld [vmem:[#allocation9 + $0x158] sm:$0xff] }
  0xf5   :  { %1235 = vst [vmem:[#allocation10 + $0xc0] sm:$0xff] %v1171_v63  ;;  %v898_v10 = vadd.f32 %v1688_v43, %v552_v8  ;;  %v914_v11 = vadd.f32 %v1688_v43, %v592_v9  ;;  %v1013_v3 = vld [vmem:[#allocation9 + $0x1d8] sm:$0xff] }
  0xf6   :  { %v1123_v12 = vadd.f32 %v1059_v0, %v929_v6  ;;  %v1139_v13 = vadd.f32 %v1075_v1, %v945_v7  ;;  %v966_v6 = vld [vmem:[#allocation9 + $0x60] sm:$0xff] }
  0xf7   :  { %v1092_v14 = vadd.f32 %v1028_v4, %v898_v10  ;;  %v1108_v15 = vadd.f32 %v1044_v5, %v914_v11  ;;  %v982_v7 = vld [vmem:[#allocation9 + $0xe0] sm:$0xff]  ;;  %v1062_v10 = vmul.f32 %v1683_v41, %v997_v2  ;;  %v1078_v11 = vmul.f32 %v1683_v41, %v1013_v3 }
  0xf8   :  { %v1187_v18 = vmax.f32 %v1123_v12, 0.0  ;;  %v1203_v19 = vmax.f32 %v1139_v13, 0.0 }
  0xf9   :  { %v1156_v22 = vmax.f32 %v1092_v14, 0.0  ;;  %v1172_v23 = vmax.f32 %v1108_v15, 0.0  ;;  %v1031_v14 = vmul.f32 %v1683_v41, %v966_v6  ;;  %v1047_v15 = vmul.f32 %v1683_v41, %v982_v7 }
  0xfa   :  { %1251 = vst [vmem:[#allocation10 + $0x140] sm:$0xff] %v1187_v18 }
  0xfb   :  { %1267 = vst [vmem:[#allocation10 + $0x1c0] sm:$0xff] %v1203_v19  ;;  %v632_v26 = vpop.f32.mrf.mxu2  ;;  %v672_v27 = vpop.f32.mrf.mxu3 }
  0xfc   :  { %1220 = vst [vmem:[#allocation10 + $0x48] sm:$0xff] %v1156_v22  ;;  %v930_v30 = vadd.f32 %v1688_v43, %v632_v26  ;;  %v946_v31 = vadd.f32 %v1688_v43, %v672_v27  ;;  %v555_v32 = vpop.f32.mrf.mxu0  ;;  %v595_v33 = vpop.f32.mrf.mxu1  ;;  %v998_v26 = vld [vmem:[#allocation9 + $0x160] sm:$0xff] }
  0xfd   :  { %1236 = vst [vmem:[#allocation10 + $0xc8] sm:$0xff] %v1172_v23  ;;  %v899_v34 = vadd.f32 %v1688_v43, %v555_v32  ;;  %v915_v35 = vadd.f32 %v1688_v43, %v595_v33  ;;  %v1014_v27 = vld [vmem:[#allocation9 + $0x1e0] sm:$0xff] }
  0xfe   :  { %v1124_v36 = vadd.f32 %v1060_v24, %v930_v30  ;;  %v1140_v37 = vadd.f32 %v1076_v25, %v946_v31  ;;  %v967_v30 = vld [vmem:[#allocation9 + $0x68] sm:$0xff] }
  0xff   :  { %v1093_v38 = vadd.f32 %v1029_v28, %v899_v34  ;;  %v1109_v39 = vadd.f32 %v1045_v29, %v915_v35  ;;  %v983_v31 = vld [vmem:[#allocation9 + $0xe8] sm:$0xff]  ;;  %v1063_v34 = vmul.f32 %v1683_v41, %v998_v26  ;;  %v1079_v35 = vmul.f32 %v1683_v41, %v1014_v27 }
 0x100   :  { %v1188_v44 = vmax.f32 %v1124_v36, 0.0  ;;  %v1204_v45 = vmax.f32 %v1140_v37, 0.0 }
 0x101   :  { %v1157_v48 = vmax.f32 %v1093_v38, 0.0  ;;  %v1173_v49 = vmax.f32 %v1109_v39, 0.0  ;;  %v1032_v38 = vmul.f32 %v1683_v41, %v967_v30  ;;  %v1048_v39 = vmul.f32 %v1683_v41, %v983_v31 }
 0x102   :  { %1252 = vst [vmem:[#allocation10 + $0x148] sm:$0xff] %v1188_v44 }
 0x103   :  { %1268 = vst [vmem:[#allocation10 + $0x1c8] sm:$0xff] %v1204_v45  ;;  %v635_v52 = vpop.f32.mrf.mxu2  ;;  %v675_v53 = vpop.f32.mrf.mxu3 }
 0x104   :  { %1221 = vst [vmem:[#allocation10 + $0x50] sm:$0xff] %v1157_v48  ;;  %v931_v56 = vadd.f32 %v1688_v43, %v635_v52  ;;  %v947_v57 = vadd.f32 %v1688_v43, %v675_v53  ;;  %v557_v58 = vpop.f32.mrf.mxu0  ;;  %v597_v59 = vpop.f32.mrf.mxu1  ;;  %v999_v52 = vld [vmem:[#allocation9 + $0x168] sm:$0xff] }
 0x105   :  { %1237 = vst [vmem:[#allocation10 + $0xd0] sm:$0xff] %v1173_v49  ;;  %v900_v60 = vadd.f32 %v1688_v43, %v557_v58  ;;  %v916_v61 = vadd.f32 %v1688_v43, %v597_v59  ;;  %v1015_v53 = vld [vmem:[#allocation9 + $0x1e8] sm:$0xff] }
 0x106   :  { %v1125_v62 = vadd.f32 %v1061_v50, %v931_v56  ;;  %v1141_v63 = vadd.f32 %v1077_v51, %v947_v57  ;;  %v968_v56 = vld [vmem:[#allocation9 + $0x70] sm:$0xff] }
 0x107   :  { %v1094_v0 = vadd.f32 %v1030_v54, %v900_v60  ;;  %v1110_v1 = vadd.f32 %v1046_v55, %v916_v61  ;;  %v984_v57 = vld [vmem:[#allocation9 + $0xf0] sm:$0xff]  ;;  %v1064_v60 = vmul.f32 %v1683_v41, %v999_v52  ;;  %v1080_v61 = vmul.f32 %v1683_v41, %v1015_v53 }
 0x108   :  { %v1189_v4 = vmax.f32 %v1125_v62, 0.0  ;;  %v1205_v5 = vmax.f32 %v1141_v63, 0.0 }
 0x109   :  { %v1158_v8 = vmax.f32 %v1094_v0, 0.0  ;;  %v1174_v9 = vmax.f32 %v1110_v1, 0.0  ;;  %v1033_v0 = vmul.f32 %v1683_v41, %v968_v56  ;;  %v1049_v1 = vmul.f32 %v1683_v41, %v984_v57 }
 0x10a   :  { %1253 = vst [vmem:[#allocation10 + $0x150] sm:$0xff] %v1189_v4 }
 0x10b   :  { %1269 = vst [vmem:[#allocation10 + $0x1d0] sm:$0xff] %v1205_v5  ;;  %v637_v12 = vpop.f32.mrf.mxu2  ;;  %v677_v13 = vpop.f32.mrf.mxu3 }
 0x10c   :  { %1222 = vst [vmem:[#allocation10 + $0x58] sm:$0xff] %v1158_v8  ;;  %v932_v16 = vadd.f32 %v1688_v43, %v637_v12  ;;  %v948_v17 = vadd.f32 %v1688_v43, %v677_v13  ;;  %v560_v18 = vpop.f32.mrf.mxu0  ;;  %v600_v19 = vpop.f32.mrf.mxu1  ;;  %v1000_v12 = vld [vmem:[#allocation9 + $0x170] sm:$0xff] }
 0x10d   :  { %1238 = vst [vmem:[#allocation10 + $0xd8] sm:$0xff] %v1174_v9  ;;  %v901_v20 = vadd.f32 %v1688_v43, %v560_v18  ;;  %v917_v21 = vadd.f32 %v1688_v43, %v600_v19  ;;  %v1016_v13 = vld [vmem:[#allocation9 + $0x1f0] sm:$0xff] }
 0x10e   :  { %v1126_v22 = vadd.f32 %v1062_v10, %v932_v16  ;;  %v1142_v23 = vadd.f32 %v1078_v11, %v948_v17  ;;  %v969_v16 = vld [vmem:[#allocation9 + $0x78] sm:$0xff] }
 0x10f   :  { %v1095_v24 = vadd.f32 %v1031_v14, %v901_v20  ;;  %v1111_v25 = vadd.f32 %v1047_v15, %v917_v21  ;;  %v985_v17 = vld [vmem:[#allocation9 + $0xf8] sm:$0xff]  ;;  %v1065_v20 = vmul.f32 %v1683_v41, %v1000_v12  ;;  %v1081_v21 = vmul.f32 %v1683_v41, %v1016_v13 }
 0x110   :  { %v1190_v28 = vmax.f32 %v1126_v22, 0.0  ;;  %v1206_v29 = vmax.f32 %v1142_v23, 0.0 }
 0x111   :  { %v1159_v32 = vmax.f32 %v1095_v24, 0.0  ;;  %v1175_v33 = vmax.f32 %v1111_v25, 0.0  ;;  %v1034_v24 = vmul.f32 %v1683_v41, %v969_v16  ;;  %v1050_v25 = vmul.f32 %v1683_v41, %v985_v17 }
 0x112   :  { %1254 = vst [vmem:[#allocation10 + $0x158] sm:$0xff] %v1190_v28 }
 0x113   :  { %1270 = vst [vmem:[#allocation10 + $0x1d8] sm:$0xff] %v1206_v29  ;;  %v640_v36 = vpop.f32.mrf.mxu2  ;;  %v680_v37 = vpop.f32.mrf.mxu3 }
 0x114   :  { %1223 = vst [vmem:[#allocation10 + $0x60] sm:$0xff] %v1159_v32  ;;  %v933_v40 = vadd.f32 %v1688_v43, %v640_v36  ;;  %v949_v42 = vadd.f32 %v1688_v43, %v680_v37  ;;  %v562_v44 = vpop.f32.mrf.mxu0  ;;  %v602_v45 = vpop.f32.mrf.mxu1  ;;  %v1001_v36 = vld [vmem:[#allocation9 + $0x178] sm:$0xff] }
 0x115   :  { %1239 = vst [vmem:[#allocation10 + $0xe0] sm:$0xff] %v1175_v33  ;;  %v902_v46 = vadd.f32 %v1688_v43, %v562_v44  ;;  %v918_v47 = vadd.f32 %v1688_v43, %v602_v45  ;;  %v1017_v37 = vld [vmem:[#allocation9 + $0x1f8] sm:$0xff]  ;;  %v1066_v44 = vmul.f32 %v1683_v41, %v1001_v36 }
 0x116   :  { %v1127_v48 = vadd.f32 %v1063_v34, %v933_v40  ;;  %v1143_v49 = vadd.f32 %v1079_v35, %v949_v42  ;;  %v1082_v45 = vmul.f32 %v1683_v41, %v1017_v37 }
 0x117   :  { %v1096_v50 = vadd.f32 %v1032_v38, %v902_v46  ;;  %v1112_v51 = vadd.f32 %v1048_v39, %v918_v47 }
 0x118   :  { %v1191_v54 = vmax.f32 %v1127_v48, 0.0  ;;  %v1207_v55 = vmax.f32 %v1143_v49, 0.0 }
 0x119   :  { %v1160_v58 = vmax.f32 %v1096_v50, 0.0  ;;  %v1176_v59 = vmax.f32 %v1112_v51, 0.0 }
 0x11a   :  { %1255 = vst [vmem:[#allocation10 + $0x160] sm:$0xff] %v1191_v54 }
 0x11b   :  { %1271 = vst [vmem:[#allocation10 + $0x1e0] sm:$0xff] %v1207_v55  ;;  %v642_v62 = vpop.f32.mrf.mxu2  ;;  %v682_v63 = vpop.f32.mrf.mxu3 }
 0x11c   :  { %1224 = vst [vmem:[#allocation10 + $0x68] sm:$0xff] %v1160_v58  ;;  %v934_v2 = vadd.f32 %v1688_v43, %v642_v62  ;;  %v950_v3 = vadd.f32 %v1688_v43, %v682_v63  ;;  %v565_v4 = vpop.f32.mrf.mxu0  ;;  %v605_v5 = vpop.f32.mrf.mxu1 }
 0x11d   :  { %1240 = vst [vmem:[#allocation10 + $0xe8] sm:$0xff] %v1176_v59  ;;  %v903_v6 = vadd.f32 %v1688_v43, %v565_v4  ;;  %v919_v7 = vadd.f32 %v1688_v43, %v605_v5 }
 0x11e   :  { %v1128_v8 = vadd.f32 %v1064_v60, %v934_v2  ;;  %v1144_v9 = vadd.f32 %v1080_v61, %v950_v3 }
 0x11f   :  { %v1097_v10 = vadd.f32 %v1033_v0, %v903_v6  ;;  %v1113_v11 = vadd.f32 %v1049_v1, %v919_v7 }
 0x120   :  { %v1192_v14 = vmax.f32 %v1128_v8, 0.0  ;;  %v1208_v15 = vmax.f32 %v1144_v9, 0.0 }
 0x121   :  { %v1161_v18 = vmax.f32 %v1097_v10, 0.0  ;;  %v1177_v19 = vmax.f32 %v1113_v11, 0.0 }
 0x122   :  { %1256 = vst [vmem:[#allocation10 + $0x168] sm:$0xff] %v1192_v14 }
 0x123   :  { %1272 = vst [vmem:[#allocation10 + $0x1e8] sm:$0xff] %v1208_v15  ;;  %v645_v22 = vpop.f32.mrf.mxu2  ;;  %v685_v23 = vpop.f32.mrf.mxu3 }
 0x124   :  { %1225 = vst [vmem:[#allocation10 + $0x70] sm:$0xff] %v1161_v18  ;;  %v935_v26 = vadd.f32 %v1688_v43, %v645_v22  ;;  %v951_v27 = vadd.f32 %v1688_v43, %v685_v23  ;;  %v567_v28 = vpop.f32.mrf.mxu0  ;;  %v607_v29 = vpop.f32.mrf.mxu1 }
 0x125   :  { %1241 = vst [vmem:[#allocation10 + $0xf0] sm:$0xff] %v1177_v19  ;;  %v904_v30 = vadd.f32 %v1688_v43, %v567_v28  ;;  %v920_v31 = vadd.f32 %v1688_v43, %v607_v29 }
 0x126   :  { %v1129_v32 = vadd.f32 %v1065_v20, %v935_v26  ;;  %v1145_v33 = vadd.f32 %v1081_v21, %v951_v27 }
 0x127   :  { %v1098_v34 = vadd.f32 %v1034_v24, %v904_v30  ;;  %v1114_v35 = vadd.f32 %v1050_v25, %v920_v31 }
 0x128   :  { %v1193_v38 = vmax.f32 %v1129_v32, 0.0  ;;  %v1209_v39 = vmax.f32 %v1145_v33, 0.0 }
 0x129   :  { %v1162_v40 = vmax.f32 %v1098_v34, 0.0  ;;  %v1178_v42 = vmax.f32 %v1114_v35, 0.0 }
 0x12a   :  { %1257 = vst [vmem:[#allocation10 + $0x170] sm:$0xff] %v1193_v38 }
 0x12b   :  { %1273 = vst [vmem:[#allocation10 + $0x1f0] sm:$0xff] %v1209_v39  ;;  %v647_v46 = vpop.f32.mrf.mxu2  ;;  %v687_v47 = vpop.f32.mrf.mxu3 }
 0x12c   :  { %1226 = vst [vmem:[#allocation10 + $0x78] sm:$0xff] %v1162_v40  ;;  %v936_v48 = vadd.f32 %v1688_v43, %v647_v46  ;;  %v952_v49 = vadd.f32 %v1688_v43, %v687_v47 }
 0x12d   :  { %1242 = vst [vmem:[#allocation10 + $0xf8] sm:$0xff] %v1178_v42 }
 0x12e   :  { %v1130_v50 = vadd.f32 %v1066_v44, %v936_v48  ;;  %v1146_v51 = vadd.f32 %v1082_v45, %v952_v49 }
 0x130   :  { %v1194_v52 = vmax.f32 %v1130_v50, 0.0  ;;  %v1210_v53 = vmax.f32 %v1146_v51, 0.0 }
 0x132   :  { %1258 = vst [vmem:[#allocation10 + $0x178] sm:$0xff] %v1194_v52 }
 0x133   :  { %1274 = vst [vmem:[#allocation10 + $0x1f8] sm:$0xff] %v1210_v53 }
 0x134   :  { %1287 = dma.vmem_to_hbm [thread:$0]  %s1280_s4, 8192, %s1282_s15, [#allocation6], %s1635_s9, %s1635_s9, %s1636_s10  }
 0x135   :  { %1628 = dma.done.wait [#allocation6], 8192  }
 0x136   :  { %1629 = vsyncadd [#allocation6], 4294959104 }
 0x137   :  { %1292 = vsyncpa [#allocation5], 1 }
 0x138   :  { %1293 = vsyncpa [#allocation8], 1 }
 0x139   :  { %1294 = vsyncpa [#allocation6], 1 }

</bundles_post_ra>
